<compile_context>
chip_gen: v5e
topology: v5e:2x2
jax: 0.10.0
libtpu: 0.0.40
codegen_flags: <defaults>
</compile_context>

<pallas_src>
import jax
import jax.numpy as jnp
import numpy as np
from jax.experimental import pallas as pl
from jax.experimental.pallas import tpu as pltpu


# --------------------------------------------------------------------------- #
# Setup-time "band" weight construction (folds im2col into the weights)
# --------------------------------------------------------------------------- #
def _band3(w, win, stride):
    """3x3 conv (pad=1, W-stride=stride) -> banded weights, H-taps stacked along K.

    w: (3, 3, Cin, Cout) HWIO.  Returns (3*win*Cin, wout*Cout); block di holds
    bw[di][(stride*j + dj - 1)*Cin + c, j*Cout + p] = w[di, dj, c, p]
    (zero outside the image: the W zero-padding and W-stride live in the weights).
    """
    w = np.asarray(w)
    _, _, cin, cout = w.shape
    wout = (win - 1) // stride + 1
    bw = np.zeros((3, win, cin, wout, cout), w.dtype)
    for di in range(3):
        for dj in range(3):
            for j in range(wout):
                wi = stride * j + dj - 1
                if 0 <= wi < win:
                    bw[di, wi, :, j, :] = w[di, dj]
    return bw.reshape(3 * win * cin, wout * cout)


def _band1(w, win, stride):
    """1x1 conv (no pad, W-stride=stride) -> block-sparse band matrix (win*Cin, wout*Cout)."""
    w = np.asarray(w)
    cin, cout = w.shape[2], w.shape[3]
    wout = (win - 1) // stride + 1
    bw = np.zeros((win, cin, wout, cout), w.dtype)
    for j in range(wout):
        bw[stride * j, :, j, :] = w[0, 0]
    return bw.reshape(win * cin, wout * cout)


# --------------------------------------------------------------------------- #
# Fused BasicBlock kernel
# --------------------------------------------------------------------------- #
def _make_block_kernel(stride, Ho, NL, has_sc):
    def kernel(*refs):
        i = 0
        if stride == 1:
            xp_ref = refs[i]; i += 1                       # (1, H+2, W*Cin) bf16

            def x_tap(di):                                 # conv1 H-tap di rows
                return xp_ref[0, di:di + Ho, :]

            def x_sc():                                    # shortcut rows
                return xp_ref[0, 1:1 + Ho, :]
        else:                                              # stride == 2: H phase split
            xe_ref = refs[i]; xo_ref = refs[i + 1]; i += 2

            def x_tap(di):
                r0 = di // 2
                src = xe_ref if di % 2 == 0 else xo_ref
                return src[0, r0:r0 + Ho, :]

            def x_sc():
                return xo_ref[0, 0:Ho, :]

        bw1_ref = refs[i]; i += 1                          # (3*W*Cin, NL)        bf16
        bw2_ref = refs[i]; i += 1                          # (3*NL [+ W*Cin], NL) bf16
        o_ref = refs[i]; i += 1                            # (1, Ho, NL)          f32
        h1_ref = refs[i]                                   # scratch (Ho+2, NL)   bf16

        # ---- conv1 (3x3, stride, pad=1) + ReLU : ONE MXU dot, taps folded into K ----
        x_cat = jnp.concatenate([x_tap(0), x_tap(1), x_tap(2)], axis=1)
        acc = jnp.dot(x_cat, bw1_ref[...], preferred_element_type=jnp.float32)
        h1 = jnp.maximum(acc, 0.0).astype(jnp.bfloat16)

        # Row-padded intermediate stays resident in VMEM; only the two H-border rows
        # need zeros (the W-padding already lives in bw2), the interior is overwritten.
        zrow = jnp.zeros((1, NL), jnp.bfloat16)
        h1_ref[0:1, :] = zrow
        h1_ref[Ho + 1:Ho + 2, :] = zrow
        h1_ref[1:1 + Ho, :] = h1

        # ---- conv2 (3x3, s=1, pad=1) [+ projection shortcut] : ONE MXU dot ----
        taps = [h1_ref[di:di + Ho, :] for di in range(3)]
        if has_sc:
            taps.append(x_sc())                            # 1x1 shortcut folded into K
        h_cat = jnp.concatenate(taps, axis=1)
        acc = jnp.dot(h_cat, bw2_ref[...], preferred_element_type=jnp.float32)

        if not has_sc:
            acc = acc + x_sc().astype(jnp.float32)         # identity shortcut (VPU add)

        # ---- residual ReLU; lane-dense store (NL = Wo*P >= 128) ----
        o_ref[0] = jnp.maximum(acc, 0.0)

    return kernel


def make_basic_block(w1, w2, wsc, stride, N, H, W):
    """Build a fused-Pallas BasicBlock forward.

    w1: (3,3,Cin,P), w2: (3,3,P,P), wsc: (1,1,Cin,P) or None  (HWIO, f32).
    Returns apply(x_nchw) -> (N, P, Ho, Wo) f32.
    """
    assert stride in (1, 2), "H-phase decomposition implemented for stride 1 or 2"
    cin, planes = w1.shape[2], w1.shape[3]
    has_sc = wsc is not None
    assert has_sc == (stride != 1 or cin != planes)
    Ho = (H - 1) // stride + 1
    Wo = (W - 1) // stride + 1
    K1 = W * cin
    NL = Wo * planes

    # Band weights built once on host; bf16 for the MXU, f32 accumulation in-kernel.
    bw1 = jnp.asarray(_band3(w1, W, stride), jnp.bfloat16)          # (3*K1, NL)
    b2 = _band3(w2, Wo, 1)                                          # (3*NL, NL)
    if has_sc:
        b2 = np.concatenate([b2, _band1(wsc, W, stride)], axis=0)   # (+K1, NL)
    bw2 = jnp.asarray(b2, jnp.bfloat16)
    K2 = bw2.shape[0]

    kernel = _make_block_kernel(stride, Ho, NL, has_sc)

    if stride == 1:
        x_specs = [pl.BlockSpec((1, H + 2, K1), lambda n: (n, 0, 0))]
    else:
        n_even = (H + 2 + 1) // 2                           # even-phase rows of padded H
        n_odd = (H + 2) // 2                                # odd-phase rows
        x_specs = [pl.BlockSpec((1, n_even, K1), lambda n: (n, 0, 0)),
                   pl.BlockSpec((1, n_odd, K1), lambda n: (n, 0, 0))]
    w_specs = [pl.BlockSpec((3 * K1, NL), lambda n: (0, 0)),
               pl.BlockSpec((K2, NL), lambda n: (0, 0))]

    grid_spec = pltpu.PrefetchScalarGridSpec(
        num_scalar_prefetch=0,
        grid=(N,),                                          # one grid step per sample
        in_specs=x_specs + w_specs,
        out_specs=pl.BlockSpec((1, Ho, NL), lambda n: (n, 0, 0)),
        scratch_shapes=[pltpu.VMEM((Ho + 2, NL), jnp.bfloat16)],
    )
    call = pl.pallas_call(
        kernel,
        out_shape=jax.ShapeDtypeStruct((N, Ho, NL), jnp.float32),
        grid_spec=grid_spec,
        compiler_params=pltpu.CompilerParams(
            dimension_semantics=("parallel",)),             # feed both TCs on v7x
    )

    def apply(x_nchw):
        # NCHW -> lane-dense (H, W*Cin) slabs, H-padded once, no patch duplication.
        x = jnp.transpose(x_nchw, (0, 2, 3, 1)).astype(jnp.float32)
        xr = x.reshape(N, H, K1)
        xrp = jnp.pad(xr, ((0, 0), (1, 1), (0, 0))).astype(jnp.bfloat16)
        if stride == 1:
            xs = (xrp,)
        else:
            xs = (xrp[:, 0::2, :], xrp[:, 1::2, :])         # H phase split
        out = call(*xs, bw1, bw2)                           # (N, Ho, Wo*P) f32
        out = out.reshape(N, Ho, Wo, planes)
        return jnp.transpose(out, (0, 3, 1, 2))             # back to NCHW

    return jax.jit(apply)


# --------------------------------------------------------------------------- #
# Plain-JAX reference (matches the PyTorch BasicBlock with use_batchnorm=False)
# --------------------------------------------------------------------------- #
def basic_block_ref(x_nchw, w1, w2, wsc, stride):
    x = jnp.transpose(x_nchw, (0, 2, 3, 1))
    dn = ("NHWC", "HWIO", "NHWC")

    def conv(h, w, s, p):
        return jax.lax.conv_general_dilated(h, w, (s, s), [(p, p), (p, p)],
                                            dimension_numbers=dn)

    out = jax.nn.relu(conv(x, w1, stride, 1))
    out = conv(out, w2, 1, 1)
    sc = conv(x, wsc, stride, 0) if wsc is not None else x
    out = jax.nn.relu(out + sc)
    return jnp.transpose(out, (0, 3, 1, 2))


# --------------------------------------------------------------------------- #
if __name__ == "__main__":
    key = jax.random.PRNGKey(0)
    k1, k2, k3, k4, kx = jax.random.split(key, 5)

    def he_init(k, kh, kw, ci, co):
        return jax.random.normal(k, (kh, kw, ci, co), jnp.float32) * (2.0 / (kh * kw * ci)) ** 0.5

    # Case A: stride-2 block with channel expansion (1x1-conv shortcut).
    N, Cin, H, W, planes, stride = 2, 16, 16, 16, 32, 2
    w1 = he_init(k1, 3, 3, Cin, planes)
    w2 = he_init(k2, 3, 3, planes, planes)
    wsc = he_init(k3, 1, 1, Cin, planes)
    x = jax.random.normal(kx, (N, Cin, H, W), jnp.float32)

    block_a = make_basic_block(w1, w2, wsc, stride, N, H, W)
    out_a = block_a(x)
    jax.block_until_ready(out_a)
    ref_a = basic_block_ref(x, w1, w2, wsc, stride)
    assert out_a.shape == (N, planes, H // stride, W // stride)
    assert bool(jnp.all(jnp.isfinite(out_a)))
    rel_a = float(jnp.max(jnp.abs(out_a - ref_a))) / (float(jnp.max(jnp.abs(ref_a))) + 1e-6)
    assert rel_a < 5e-2, f"case A mismatch, rel err {rel_a}"

    # Case B: stride-1 block with identity shortcut.
    w1b = he_init(k4, 3, 3, Cin, Cin)
    w2b = he_init(k2, 3, 3, Cin, Cin)
    block_b = make_basic_block(w1b, w2b, None, 1, N, H, W)
    out_b = block_b(x)
    jax.block_until_ready(out_b)
    ref_b = basic_block_ref(x, w1b, w2b, None, 1)
    assert out_b.shape == (N, Cin, H, W)
    assert bool(jnp.all(jnp.isfinite(out_b)))
    rel_b = float(jnp.max(jnp.abs(out_b - ref_b))) / (float(jnp.max(jnp.abs(ref_b))) + 1e-6)
    assert rel_b < 5e-2, f"case B mismatch, rel err {rel_b}"

    print("KERNEL_OK")
</pallas_src>

<mosaic_0001>
module attributes {stable_mosaic.version = 11 : i64} {
  func.func @kernel(%arg0: i32, %arg1: memref<1x9x256xbf16, #tpu.memory_space<vmem>>, %arg2: memref<1x9x256xbf16, #tpu.memory_space<vmem>>, %arg3: memref<768x256xbf16, #tpu.memory_space<vmem>>, %arg4: memref<1024x256xbf16, #tpu.memory_space<vmem>>, %arg5: memref<1x8x256xf32, #tpu.memory_space<vmem>>, %arg6: memref<10x256xbf16, #tpu.memory_space<vmem>>) attributes {dimension_semantics = [#tpu.dimension_semantics<parallel>], iteration_bounds = array<i64: 2>, scalar_prefetch = 0 : i64, scratch_operands = 1 : i64, tpu.core_type = #tpu.core_type<tc>, window_params = [{transform_indices = @transform_0, window_bounds = array<i64: 1, 9, 256>}, {transform_indices = @transform_1, window_bounds = array<i64: 1, 9, 256>}, {pipeline_mode = #tpu.pipeline_mode<synchronous>, transform_indices = @transform_2, window_bounds = array<i64: 768, 256>}, {pipeline_mode = #tpu.pipeline_mode<synchronous>, transform_indices = @transform_3, window_bounds = array<i64: 1024, 256>}, {transform_indices = @transform_4, window_bounds = array<i64: 1, 8, 256>}]} {
    %c0 = arith.constant 0 : index
    %c0_0 = arith.constant 0 : index
    %c0_1 = arith.constant 0 : index
    %0 = vector.load %arg1[%c0, %c0_0, %c0_1] : memref<1x9x256xbf16, #tpu.memory_space<vmem>>, vector<1x8x256xbf16>
    %1 = vector.shape_cast %0 : vector<1x8x256xbf16> to vector<8x256xbf16>
    %c0_2 = arith.constant 0 : index
    %c0_3 = arith.constant 0 : index
    %c0_4 = arith.constant 0 : index
    %2 = vector.load %arg2[%c0_2, %c0_3, %c0_4] : memref<1x9x256xbf16, #tpu.memory_space<vmem>>, vector<1x8x256xbf16>
    %3 = vector.shape_cast %2 : vector<1x8x256xbf16> to vector<8x256xbf16>
    %c0_5 = arith.constant 0 : index
    %c1 = arith.constant 1 : index
    %c0_6 = arith.constant 0 : index
    %4 = vector.load %arg1[%c0_5, %c1, %c0_6] : memref<1x9x256xbf16, #tpu.memory_space<vmem>>, vector<1x8x256xbf16>
    %5 = vector.shape_cast %4 : vector<1x8x256xbf16> to vector<8x256xbf16>
    %6 = tpu.concatenate %1, %3, %5 in 1 : vector<8x256xbf16>, vector<8x256xbf16>, vector<8x256xbf16> -> vector<8x768xbf16>
    %c0_7 = arith.constant 0 : index
    %c0_8 = arith.constant 0 : index
    %7 = vector.load %arg3[%c0_7, %c0_8] : memref<768x256xbf16, #tpu.memory_space<vmem>>, vector<768x256xbf16>
    %cst = arith.constant dense<0.000000e+00> : vector<8x256xf32>
    %8 = tpu.matmul %6, %7, %cst {dimension_numbers = #tpu.dot_dimension_numbers<[1], [0], [0], [1], [0, 0, 1, 1], [], []>} : vector<8x768xbf16>, vector<768x256xbf16>, vector<8x256xf32> -> vector<8x256xf32>
    %cst_9 = arith.constant 0.000000e+00 : f32
    %9 = vector.broadcast %cst_9 : f32 to vector<8x256xf32>
    %10 = arith.maximumf %8, %9 : vector<8x256xf32>
    %11 = arith.truncf %10 : vector<8x256xf32> to vector<8x256xbf16>
    %cst_10 = arith.constant 0.000000e+00 : bf16
    %12 = vector.broadcast %cst_10 : bf16 to vector<1x256xbf16>
    %c0_11 = arith.constant 0 : index
    %c0_12 = arith.constant 0 : index
    %13 = vector.load %arg6[%c0_11, %c0_12] : memref<10x256xbf16, #tpu.memory_space<vmem>>, vector<1x256xbf16>
    tpu.vector_store %arg6[%c0_11, %c0_12], %12 {strides = array<i32>} : memref<10x256xbf16, #tpu.memory_space<vmem>>, vector<1x256xbf16>,
    %c9 = arith.constant 9 : index
    %c0_13 = arith.constant 0 : index
    %14 = vector.load %arg6[%c9, %c0_13] : memref<10x256xbf16, #tpu.memory_space<vmem>>, vector<1x256xbf16>
    tpu.vector_store %arg6[%c9, %c0_13], %12 {strides = array<i32>} : memref<10x256xbf16, #tpu.memory_space<vmem>>, vector<1x256xbf16>,
    %c1_14 = arith.constant 1 : index
    %c0_15 = arith.constant 0 : index
    %15 = vector.load %arg6[%c1_14, %c0_15] : memref<10x256xbf16, #tpu.memory_space<vmem>>, vector<8x256xbf16>
    tpu.vector_store %arg6[%c1_14, %c0_15], %11 {strides = array<i32>} : memref<10x256xbf16, #tpu.memory_space<vmem>>, vector<8x256xbf16>,
    %c0_16 = arith.constant 0 : index
    %c0_17 = arith.constant 0 : index
    %16 = vector.load %arg6[%c0_16, %c0_17] : memref<10x256xbf16, #tpu.memory_space<vmem>>, vector<8x256xbf16>
    %c1_18 = arith.constant 1 : index
    %c0_19 = arith.constant 0 : index
    %17 = vector.load %arg6[%c1_18, %c0_19] : memref<10x256xbf16, #tpu.memory_space<vmem>>, vector<8x256xbf16>
    %c2 = arith.constant 2 : index
    %c0_20 = arith.constant 0 : index
    %18 = vector.load %arg6[%c2, %c0_20] : memref<10x256xbf16, #tpu.memory_space<vmem>>, vector<8x256xbf16>
    %c0_21 = arith.constant 0 : index
    %c0_22 = arith.constant 0 : index
    %c0_23 = arith.constant 0 : index
    %19 = vector.load %arg2[%c0_21, %c0_22, %c0_23] : memref<1x9x256xbf16, #tpu.memory_space<vmem>>, vector<1x8x256xbf16>
    %20 = vector.shape_cast %19 : vector<1x8x256xbf16> to vector<8x256xbf16>
    %21 = tpu.concatenate %16, %17, %18, %20 in 1 : vector<8x256xbf16>, vector<8x256xbf16>, vector<8x256xbf16>, vector<8x256xbf16> -> vector<8x1024xbf16>
    %c0_24 = arith.constant 0 : index
    %c0_25 = arith.constant 0 : index
    %22 = vector.load %arg4[%c0_24, %c0_25] : memref<1024x256xbf16, #tpu.memory_space<vmem>>, vector<1024x256xbf16>
    %cst_26 = arith.constant dense<0.000000e+00> : vector<8x256xf32>
    %23 = tpu.matmul %21, %22, %cst_26 {dimension_numbers = #tpu.dot_dimension_numbers<[1], [0], [0], [1], [0, 0, 1, 1], [], []>} : vector<8x1024xbf16>, vector<1024x256xbf16>, vector<8x256xf32> -> vector<8x256xf32>
    %cst_27 = arith.constant 0.000000e+00 : f32
    %24 = vector.broadcast %cst_27 : f32 to vector<8x256xf32>
    %25 = arith.maximumf %23, %24 : vector<8x256xf32>
    %c0_28 = arith.constant 0 : index
    %c0_29 = arith.constant 0 : index
    %c0_30 = arith.constant 0 : index
    %26 = vector.load %arg5[%c0_28, %c0_29, %c0_30] : memref<1x8x256xf32, #tpu.memory_space<vmem>>, vector<1x8x256xf32>
    %27 = vector.shape_cast %26 : vector<1x8x256xf32> to vector<8x256xf32>
    %28 = vector.shape_cast %25 : vector<8x256xf32> to vector<1x8x256xf32>
    tpu.vector_store %arg5[%c0_28, %c0_29, %c0_30], %28 {strides = array<i32>} : memref<1x8x256xf32, #tpu.memory_space<vmem>>, vector<1x8x256xf32>,
    return
  }
  func.func @transform_0(%arg0: i32) -> (i32, i32, i32) {
    %c0_i32 = arith.constant 0 : i32
    %c0_i32_0 = arith.constant 0 : i32
    %c0_i32_1 = arith.constant 0 : i32
    return %arg0, %c0_i32, %c0_i32_0 : i32, i32, i32
  }
  func.func @transform_1(%arg0: i32) -> (i32, i32, i32) {
    %c0_i32 = arith.constant 0 : i32
    %c0_i32_0 = arith.constant 0 : i32
    %c0_i32_1 = arith.constant 0 : i32
    return %arg0, %c0_i32, %c0_i32_0 : i32, i32, i32
  }
  func.func @transform_2(%arg0: i32) -> (i32, i32) {
    %c0_i32 = arith.constant 0 : i32
    %c0_i32_0 = arith.constant 0 : i32
    %c0_i32_1 = arith.constant 0 : i32
    return %c0_i32, %c0_i32_0 : i32, i32
  }
  func.func @transform_3(%arg0: i32) -> (i32, i32) {
    %c0_i32 = arith.constant 0 : i32
    %c0_i32_0 = arith.constant 0 : i32
    %c0_i32_1 = arith.constant 0 : i32
    return %c0_i32, %c0_i32_0 : i32, i32
  }
  func.func @transform_4(%arg0: i32) -> (i32, i32, i32) {
    %c0_i32 = arith.constant 0 : i32
    %c0_i32_0 = arith.constant 0 : i32
    %c0_i32_1 = arith.constant 0 : i32
    return %arg0, %c0_i32, %c0_i32_0 : i32, i32, i32
  }
}

</mosaic_0001>

<bundles_post_ra>
// kernel: apply.1
= control target key start
LH: loop header
LB: loop body
LE: loop exit
PB: predicated region body
PF: predicated region fallthrough
CT: control target
= control target key end

     0   :  { %9 = vsyncpa [#allocation4], 0  ;;  %s3384_s15 = smov 0   ;;  %s4333_s0 = inlined_call_operand.vmem [shape: bf16[2,9,256], index: 0, kind: input, shape index: {}]   ;;  %s4334_s1 = inlined_call_operand.vmem [shape: bf16[2,9,256], index: 1, kind: input, shape index: {}]   ;;  %s4335_s2 = inlined_call_operand.hbm [shape: bf16[768,256], index: 2, kind: input, shape index: {}]   ;;  %s4336_s3 = inlined_call_operand.vmem [shape: bf16[1024,256], index: 3, kind: input, shape index: {}]   ;;  %s4337_s4 = inlined_call_operand.vmem [shape: f32[2,8,256], index: 4, kind: output, shape index: {}]  }
   0x1 LB: > { %s151_s18 = sshll.u32 %s4335_s2, 4  ;;  %s3393_s19 = sadd.s32 4294967295, %s3354_s15   ;;  %s3354_s15 = sphi %s3384_s15, %s15_s15   ;;  %s152_s18 = int_to_ptr.hbm [resolvable:$true] %s151_s18 }
   0x2   : > { %p2157_p0 = scmp.ge.s32.totalorder %s3354_s15, 1  ;;  %p140_p1 = scmp.lt.s32.totalorder %s3354_s15, 3 }
   0x3   : > { %p3301_p2 = scmp.eq.s32.totalorder %s3393_s19, 0  ;;  %s3356_s20 = smov [#allocation3]  }
   0x4   : > { %p141_p3 = pnand %p2157_p0, %p140_p1  ;;  %s153_s21 = sshll.u32 %s3356_s20, 4  ;;  %s154_s21 = int_to_ptr.vmem [resolvable:$true] %s153_s21 }
   0x5   : > { %s3357_s22 = smov 128   ;;  %s3358_s23 = smov 8  }
   0x6   : > { %p3297_p4 = pneg %p141_p3  ;;  %188 = sbr.rel (%p141_p3) target bundleno = 482 (0x1e2), region = 36 }
   0x8   : > { %p3298_p5 = pnand %p3301_p2, %p3297_p4 }
   0xa   : > { %3300 = dma.hbm_to_vmem [thread:$0]  (!%p3298_p5), %s152_s18, 12288, %s154_s21, [#allocation4], %s3357_s22, %s3357_s22, %s3358_s23  }
   0xb   : > { %3349 = dma.done.wait (%p3301_p2), [#allocation4], 12288  }
   0xc   : > { %3351 = vsyncadd (%p3301_p2), [#allocation4], 4294955008  ;;  %v2226_v0 = vld [vmem:[#allocation3 + $0x70] sm:$0xf]  ;;  %v3084_v1 = vld [vmem:[#allocation3 + $0x74] sm:$0xf0] }
   0xd   : > { %v2290_v2 = vld [vmem:[#allocation3 + $0xf0] sm:$0xf]  ;;  %v2227_v3 = vor.u32 %v3084_v1, %v2226_v0  ;;  %v3100_v4 = vld [vmem:[#allocation3 + $0xf4] sm:$0xf0]  ;;  %v2218_v11 = vld [vmem:[#allocation3 + $0x60] sm:$0xf] }
   0xe   : > { %v2354_v5 = vld [vmem:[#allocation3 + $0x170] sm:$0xf]  ;;  %v3116_v6 = vld [vmem:[#allocation3 + $0x174] sm:$0xf0]  ;;  %v2291_v7 = vor.u32 %v3100_v4, %v2290_v2  ;;  %v3082_v13 = vld [vmem:[#allocation3 + $0x64] sm:$0xf0] }
   0xf   : > { %v2355_v8 = vor.u32 %v3116_v6, %v2354_v5  ;;  %v2418_v9 = vld [vmem:[#allocation3 + $0x1f0] sm:$0xf]  ;;  %v3132_v10 = vld [vmem:[#allocation3 + $0x1f4] sm:$0xf0]  ;;  %850 = vmatpush.bf16.msra.mxu0 %v2227_v3  ;;  %v2282_v14 = vld [vmem:[#allocation3 + $0xe0] sm:$0xf]  ;;  %v2219_v16 = vor.u32 %v3082_v13, %v2218_v11 }
  0x10   : > { %v2419_v12 = vor.u32 %v3132_v10, %v2418_v9  ;;  %v3098_v15 = vld [vmem:[#allocation3 + $0xe4] sm:$0xf0]  ;;  %863 = vmatpush.bf16.msra.mxu1 %v2291_v7  ;;  %v2346_v18 = vld [vmem:[#allocation3 + $0x160] sm:$0xf]  ;;  %v2210_v23 = vld [vmem:[#allocation3 + $0x50] sm:$0xf] }
  0x11   : > { %876 = vmatpush.bf16.msra.mxu2 %v2355_v8  ;;  %v2283_v17 = vor.u32 %v3098_v15, %v2282_v14  ;;  %v3114_v19 = vld [vmem:[#allocation3 + $0x164] sm:$0xf0]  ;;  %v2410_v20 = vld [vmem:[#allocation3 + $0x1e0] sm:$0xf]  ;;  %v3080_v24 = vld [vmem:[#allocation3 + $0x54] sm:$0xf0] }
  0x12   : > { %889 = vmatpush.bf16.msra.mxu3 %v2419_v12  ;;  %v2347_v21 = vor.u32 %v3114_v19, %v2346_v18  ;;  %v3130_v22 = vld [vmem:[#allocation3 + $0x1e4] sm:$0xf0]  ;;  %v2274_v26 = vld [vmem:[#allocation3 + $0xd0] sm:$0xf]  ;;  %v3096_v27 = vld [vmem:[#allocation3 + $0xd4] sm:$0xf0]  ;;  %v2211_v29 = vor.u32 %v3080_v24, %v2210_v23 }
  0x13   : > { %v2411_v25 = vor.u32 %v3130_v22, %v2410_v20  ;;  %v2338_v28 = vld [vmem:[#allocation3 + $0x150] sm:$0xf]  ;;  %851 = vmatpush.bf16.msra.mxu0 %v2219_v16  ;;  %v3112_v30 = vld [vmem:[#allocation3 + $0x154] sm:$0xf0]  ;;  %v2275_v33 = vor.u32 %v3096_v27, %v2274_v26  ;;  %v2202_v35 = vld [vmem:[#allocation3 + $0x40] sm:$0xf] }
  0x14   : > { %v2402_v31 = vld [vmem:[#allocation3 + $0x1d0] sm:$0xf]  ;;  %v3128_v32 = vld [vmem:[#allocation3 + $0x1d4] sm:$0xf0]  ;;  %864 = vmatpush.bf16.msra.mxu1 %v2283_v17  ;;  %v2339_v34 = vor.u32 %v3112_v30, %v2338_v28  ;;  %v3078_v36 = vld [vmem:[#allocation3 + $0x44] sm:$0xf0] }
  0x15   : > { %877 = vmatpush.bf16.msra.mxu2 %v2347_v21  ;;  %v2266_v37 = vld [vmem:[#allocation3 + $0xc0] sm:$0xf]  ;;  %v2403_v38 = vor.u32 %v3128_v32, %v2402_v31  ;;  %v3094_v39 = vld [vmem:[#allocation3 + $0xc4] sm:$0xf0]  ;;  %v2203_v44 = vor.u32 %v3078_v36, %v2202_v35  ;;  %v2194_v47 = vld [vmem:[#allocation3 + $0x30] sm:$0xf] }
  0x16   : > { %890 = vmatpush.bf16.msra.mxu3 %v2411_v25  ;;  %v2330_v40 = vld [vmem:[#allocation3 + $0x140] sm:$0xf]  ;;  %v3110_v41 = vld [vmem:[#allocation3 + $0x144] sm:$0xf0]  ;;  %v2267_v45 = vor.u32 %v3094_v39, %v2266_v37  ;;  %v3076_v48 = vld [vmem:[#allocation3 + $0x34] sm:$0xf0] }
  0x17   : > { %v2394_v42 = vld [vmem:[#allocation3 + $0x1c0] sm:$0xf]  ;;  %v3126_v43 = vld [vmem:[#allocation3 + $0x1c4] sm:$0xf0]  ;;  %852 = vmatpush.bf16.msra.mxu0 %v2211_v29  ;;  %v2331_v46 = vor.u32 %v3110_v41, %v2330_v40  ;;  %v2258_v49 = vld [vmem:[#allocation3 + $0xb0] sm:$0xf]  ;;  %v2195_v56 = vor.u32 %v3076_v48, %v2194_v47 }
  0x18   : > { %865 = vmatpush.bf16.msra.mxu1 %v2275_v33  ;;  %v2395_v50 = vor.u32 %v3126_v43, %v2394_v42  ;;  %v3092_v51 = vld [vmem:[#allocation3 + $0xb4] sm:$0xf0]  ;;  %v2322_v52 = vld [vmem:[#allocation3 + $0x130] sm:$0xf]  ;;  %v2186_v59 = vld [vmem:[#allocation3 + $0x20] sm:$0xf] }
  0x19   : > { %878 = vmatpush.bf16.msra.mxu2 %v2339_v34  ;;  %v3108_v53 = vld [vmem:[#allocation3 + $0x134] sm:$0xf0]  ;;  %v2386_v54 = vld [vmem:[#allocation3 + $0x1b0] sm:$0xf]  ;;  %v2259_v57 = vor.u32 %v3092_v51, %v2258_v49  ;;  %v3074_v60 = vld [vmem:[#allocation3 + $0x24] sm:$0xf0] }
  0x1a   : > { %891 = vmatpush.bf16.msra.mxu3 %v2403_v38  ;;  %v3124_v55 = vld [vmem:[#allocation3 + $0x1b4] sm:$0xf0]  ;;  %v2323_v58 = vor.u32 %v3108_v53, %v2322_v52  ;;  %v2250_v61 = vld [vmem:[#allocation3 + $0xa0] sm:$0xf]  ;;  %v3090_v63 = vld [vmem:[#allocation3 + $0xa4] sm:$0xf0]  ;;  %v2187_v4 = vor.u32 %v3074_v60, %v2186_v59 }
  0x1b   : > { %853 = vmatpush.bf16.msra.mxu0 %v2203_v44  ;;  %v2387_v62 = vor.u32 %v3124_v55, %v2386_v54  ;;  %v2314_v0 = vld [vmem:[#allocation3 + $0x120] sm:$0xf]  ;;  %v3106_v1 = vld [vmem:[#allocation3 + $0x124] sm:$0xf0]  ;;  %p220_p6 = scmp.lt.s32.totalorder %s3393_s19, 1  ;;  %v2251_v5 = vor.u32 %v3090_v63, %v2250_v61  ;;  %vm1009_vm0 = vcmask 1040384  }
  0x1c   : > { %866 = vmatpush.bf16.msra.mxu1 %v2267_v45  ;;  %v2378_v2 = vld [vmem:[#allocation3 + $0x1a0] sm:$0xf]  ;;  %v3122_v3 = vld [vmem:[#allocation3 + $0x1a4] sm:$0xf0]  ;;  %v2315_v6 = vor.u32 %v3106_v1, %v2314_v0  ;;  %v2178_v7 = vld [vmem:[#allocation3 + $0x10] sm:$0xf] }
  0x1d   : > { %879 = vmatpush.bf16.msra.mxu2 %v2331_v46  ;;  %v3072_v8 = vld [vmem:[#allocation3 + $0x14] sm:$0xf0]  ;;  %v2242_v9 = vld [vmem:[#allocation3 + $0x90] sm:$0xf]  ;;  %v2379_v10 = vor.u32 %v3122_v3, %v2378_v2  ;;  %v2170_v17 = vld [vmem:[#allocation3] sm:$0xf] }
  0x1e   : > { %892 = vmatpush.bf16.msra.mxu3 %v2395_v50  ;;  %v3088_v11 = vld [vmem:[#allocation3 + $0x94] sm:$0xf0]  ;;  %v2306_v12 = vld [vmem:[#allocation3 + $0x110] sm:$0xf]  ;;  %v2179_v16 = vor.u32 %v3072_v8, %v2178_v7  ;;  %v3070_v18 = vld [vmem:[#allocation3 + $0x4] sm:$0xf0] }
  0x1f   : > { %854 = vmatpush.bf16.msra.mxu0 %v2195_v56  ;;  %v3104_v13 = vld [vmem:[#allocation3 + $0x114] sm:$0xf0]  ;;  %v2370_v14 = vld [vmem:[#allocation3 + $0x190] sm:$0xf]  ;;  %s4347_s19 = smov (!%p220_p6, %s3393_s19), 1  ;;  %v2243_v19 = vor.u32 %v3088_v11, %v2242_v9  ;;  %v2171_v31 = vor.u32 %v3070_v18, %v2170_v17  ;;  %vm1012_vm2 = vcmask 1044484  }
  0x20   : > { %867 = vmatpush.bf16.msra.mxu1 %v2259_v57  ;;  %v3120_v15 = vld [vmem:[#allocation3 + $0x194] sm:$0xf0]  ;;  %v2307_v20 = vor.u32 %v3104_v13, %v2306_v12  ;;  %v2234_v21 = vld [vmem:[#allocation3 + $0x80] sm:$0xf]  ;;  %v3086_v22 = vld [vmem:[#allocation3 + $0x84] sm:$0xf0] }
  0x21   : > { %880 = vmatpush.bf16.msra.mxu2 %v2323_v58  ;;  %v2298_v23 = vld [vmem:[#allocation3 + $0x100] sm:$0xf]  ;;  %v2371_v24 = vor.u32 %v3120_v15, %v2370_v14  ;;  %v3102_v25 = vld [vmem:[#allocation3 + $0x104] sm:$0xf0]  ;;  %v2482_v28 = vld [vmem:[#allocation3 + $0x270] sm:$0xf]  ;;  %v2235_v35 = vor.u32 %v3086_v22, %v2234_v21 }
  0x22   : > { %893 = vmatpush.bf16.msra.mxu3 %v2387_v62  ;;  %v2362_v26 = vld [vmem:[#allocation3 + $0x180] sm:$0xf]  ;;  %v3118_v27 = vld [vmem:[#allocation3 + $0x184] sm:$0xf0]  ;;  %v3148_v29 = vld [vmem:[#allocation3 + $0x274] sm:$0xf0]  ;;  %v2299_v36 = vor.u32 %v3102_v25, %v2298_v23 }
  0x23   : > { %855 = vmatpush.bf16.msra.mxu0 %v2187_v4  ;;  %v2546_v30 = vld [vmem:[#allocation3 + $0x2f0] sm:$0xf]  ;;  %v3164_v32 = vld [vmem:[#allocation3 + $0x2f4] sm:$0xf0]  ;;  %v3083_v33 = vld [vmem:[#allocation3 + $0x74] sm:$0xf]  ;;  %v2363_v39 = vor.u32 %v3118_v27, %v2362_v26  ;;  %v2483_v40 = vor.u32 %v3148_v29, %v2482_v28 }
  0x24   : > { %868 = vmatpush.bf16.msra.mxu1 %v2251_v5  ;;  %v2228_v34 = vld [vmem:[#allocation3 + $0x78] sm:$0xf0]  ;;  %v3099_v37 = vld [vmem:[#allocation3 + $0xf4] sm:$0xf]  ;;  %s3402_s24 = sshll.u32 %s4347_s19, 4  ;;  %v2547_v41 = vor.u32 %v3164_v32, %v2546_v30  ;;  %vm1037_vm12 = vcmask 1043456  }
  0x25   : > { %881 = vmatpush.bf16.msra.mxu2 %v2315_v6  ;;  %v2292_v38 = vld [vmem:[#allocation3 + $0xf8] sm:$0xf0]  ;;  %v2231_v42 = vor.u32 %v3083_v33, %v2228_v34  ;;  %v2474_v43 = vld [vmem:[#allocation3 + $0x260] sm:$0xf]  ;;  %v3146_v44 = vld [vmem:[#allocation3 + $0x264] sm:$0xf0]  ;;  %s3408_s27 = scalar_lea.vmem %s4333_s0, %s3402_s24  ;;  %s229_s30 = scalar_lea.vmem %s4334_s1, %s3402_s24 }
  0x26   : > { %894 = vmatpush.bf16.msra.mxu3 %v2379_v10  ;;  %v2538_v45 = vld [vmem:[#allocation3 + $0x2e0] sm:$0xf]  ;;  %v2295_v46 = vor.u32 %v3099_v37, %v2292_v38  ;;  %v3162_v47 = vld [vmem:[#allocation3 + $0x2e4] sm:$0xf0]  ;;  %v3081_v48 = vld [vmem:[#allocation3 + $0x64] sm:$0xf]  ;;  %v2475_v52 = vor.u32 %v3146_v44, %v2474_v43  ;;  %s234_s16 = scalar_lea.vmem %s4337_s4, %s3402_s24 }
  0x27   : > { %856 = vmatpush.bf16.msra.mxu0 %v2179_v16  ;;  %v2220_v49 = vld [vmem:[#allocation3 + $0x68] sm:$0xf0]  ;;  %v3097_v50 = vld [vmem:[#allocation3 + $0xe4] sm:$0xf]  ;;  %v2466_v53 = vld [vmem:[#allocation3 + $0x250] sm:$0xf]  ;;  %v2539_v55 = vor.u32 %v3162_v47, %v2538_v45 }
  0x28   : > { %869 = vmatpush.bf16.msra.mxu1 %v2243_v19  ;;  %v2284_v51 = vld [vmem:[#allocation3 + $0xe8] sm:$0xf0]  ;;  %v3144_v54 = vld [vmem:[#allocation3 + $0x254] sm:$0xf0]  ;;  %v2223_v56 = vor.u32 %v3081_v48, %v2220_v49  ;;  %v2530_v57 = vld [vmem:[#allocation3 + $0x2d0] sm:$0xf] }
  0x29   : > { %882 = vmatpush.bf16.msra.mxu2 %v2307_v20  ;;  %v3160_v58 = vld [vmem:[#allocation3 + $0x2d4] sm:$0xf0]  ;;  %v236_v59 = vld [vmem:[%s3408_s27] sm:$0xff]  ;;  %v2287_v60 = vor.u32 %v3097_v50, %v2284_v51  ;;  %v2212_v62 = vld [vmem:[#allocation3 + $0x58] sm:$0xf0]  ;;  %v2467_v6 = vor.u32 %v3144_v54, %v2466_v53  ;;  %vm1039_vm13 = vcmask 1047556  }
  0x2a   : > { %895 = vmatpush.bf16.msra.mxu3 %v2371_v24  ;;  %v3079_v61 = vld [vmem:[#allocation3 + $0x54] sm:$0xf]  ;;  %v3415_v63 = vunpack.c.l.b16 %v236_v59  ;;  %v3417_v1 = vunpack.c.h.b16 %v236_v59  ;;  %v2276_v3 = vld [vmem:[#allocation3 + $0xd8] sm:$0xf0]  ;;  %v2531_v7 = vor.u32 %v3160_v58, %v2530_v57  ;;  %v2458_v11 = vld [vmem:[#allocation3 + $0x240] sm:$0xf] }
  0x2b   : > { %857 = vmatpush.bf16.msra.mxu0 %v2171_v31  ;;  %v237_v0 = vld [vmem:[%s229_s30] sm:$0xff]  ;;  %v2215_v10 = vor.u32 %v3079_v61, %v2212_v62  ;;  %v3142_v12 = vld [vmem:[#allocation3 + $0x244] sm:$0xf0]  ;;  %v2522_v13 = vld [vmem:[#allocation3 + $0x2c0] sm:$0xf] }
  0x2c   : > { %870 = vmatpush.bf16.msra.mxu1 %v2235_v35  ;;  %v3095_v2 = vld [vmem:[#allocation3 + $0xd4] sm:$0xf]  ;;  %v247_v4 = vunpack.c.l.b16 %v237_v0  ;;  %v1091_v5 = vunpack.c.h.b16 %v237_v0  ;;  %v3421_v8 = vpack.c.b16 %v3415_v63, %v3415_v63  ;;  %v3425_v9 = vpack.c.b16 %v3417_v1, %v3417_v1  ;;  %v3158_v17 = vld [vmem:[#allocation3 + $0x2c4] sm:$0xf0]  ;;  %v3077_v18 = vld [vmem:[#allocation3 + $0x44] sm:$0xf] }
  0x2d   : > { %883 = vmatpush.bf16.msra.mxu2 %v2299_v36  ;;  %v2279_v16 = vor.u32 %v3095_v2, %v2276_v3  ;;  %v2204_v19 = vld [vmem:[#allocation3 + $0x48] sm:$0xf0]  ;;  %v3093_v20 = vld [vmem:[#allocation3 + $0xc4] sm:$0xf]  ;;  %v2459_v22 = vor.u32 %v3142_v12, %v2458_v11  ;;  %v2450_v23 = vld [vmem:[#allocation3 + $0x230] sm:$0xf]  ;;  %v2523_v24 = vor.u32 %v3158_v17, %v2522_v13 }
  0x2e   : > { %896 = vmatpush.bf16.msra.mxu3 %v2363_v39  ;;  %v3427_v14 = vpack.c.b16 %v247_v4, %v247_v4  ;;  %v3429_v15 = vpack.c.b16 %v1091_v5, %v1091_v5  ;;  %858 = vmatmul.bf16.vlgmr.msra.gmra.mxu0 %v3421_v8  ;;  %v2268_v21 = vld [vmem:[#allocation3 + $0xc8] sm:$0xf0]  ;;  %v2207_v25 = vor.u32 %v3077_v18, %v2204_v19  ;;  %v3140_v26 = vld [vmem:[#allocation3 + $0x234] sm:$0xf0]  ;;  %v2514_v27 = vld [vmem:[#allocation3 + $0x2b0] sm:$0xf] }
  0x2f   : > { %902 = vmatpush.bf16.msrb.mxu0 %v2483_v40  ;;  %871 = vmatmul.bf16.vlgmr.msra.gmra.mxu1 %v3425_v9  ;;  %v238_v28 = vld [vmem:[%s3408_s27 + $0x8] sm:$0x11]  ;;  %v2271_v29 = vor.u32 %v3093_v20, %v2268_v21  ;;  %v3075_v31 = vld [vmem:[#allocation3 + $0x34] sm:$0xf]  ;;  %v2451_v35 = vor.u32 %v3140_v26, %v2450_v23  ;;  %v2442_v39 = vld [vmem:[#allocation3 + $0x220] sm:$0xf] }
  0x30   : > { %915 = vmatpush.bf16.msrb.mxu1 %v2547_v41  ;;  %884 = vmatmul.bf16.vlgmr.msra.gmra.mxu2 %v3427_v14  ;;  %v3156_v30 = vld [vmem:[#allocation3 + $0x2b4] sm:$0xf0]  ;;  %v2196_v32 = vld [vmem:[#allocation3 + $0x38] sm:$0xf0]  ;;  %v3091_v33 = vld [vmem:[#allocation3 + $0xb4] sm:$0xf]  ;;  %v254_v36 = vunpack.c.l.b16 %v238_v28 }
  0x31   : > { %928 = vmatpush.bf16.msrb.mxu2 %v2231_v42  ;;  %897 = vmatmul.bf16.vlgmr.msra.gmra.mxu3 %v3429_v15  ;;  %v2260_v34 = vld [vmem:[#allocation3 + $0xb8] sm:$0xf0]  ;;  %v2515_v37 = vor.u32 %v3156_v30, %v2514_v27  ;;  %v2199_v38 = vor.u32 %v3075_v31, %v2196_v32  ;;  %v3138_v40 = vld [vmem:[#allocation3 + $0x224] sm:$0xf0]  ;;  %v2506_v41 = vld [vmem:[#allocation3 + $0x2a0] sm:$0xf]  ;;  %v255_v42 = vunpack.c.h.b16 %v238_v28 }
  0x32   : > { %941 = vmatpush.bf16.msrb.mxu3 %v2295_v46  ;;  %v2263_v43 = vor.u32 %v3091_v33, %v2260_v34  ;;  %v3154_v44 = vld [vmem:[#allocation3 + $0x2a4] sm:$0xf0]  ;;  %v3073_v45 = vld [vmem:[#allocation3 + $0x24] sm:$0xf]  ;;  %v2188_v46 = vld [vmem:[#allocation3 + $0x28] sm:$0xf0]  ;;  %v3437_v49 = vpack.c.b16 %v254_v36, %v3415_v63  ;;  %v2443_v50 = vor.u32 %v3138_v40, %v2442_v39 }
  0x33   : > { %903 = vmatpush.bf16.msrb.mxu0 %v2475_v52  ;;  %v3089_v47 = vld [vmem:[#allocation3 + $0xa4] sm:$0xf]  ;;  %v2252_v48 = vld [vmem:[#allocation3 + $0xa8] sm:$0xf0]  ;;  %v2434_v51 = vld [vmem:[#allocation3 + $0x210] sm:$0xf]  ;;  %v2507_v52 = vor.u32 %v3154_v44, %v2506_v41  ;;  %v2191_v53 = vor.u32 %v3073_v45, %v2188_v46  ;;  %v3440_v54 = vpack.c.b16 %v255_v42, %v3417_v1 }
  0x34   : > { %916 = vmatpush.bf16.msrb.mxu1 %v2539_v55  ;;  %v3136_v55 = vld [vmem:[#allocation3 + $0x214] sm:$0xf0]  ;;  %v2255_v58 = vor.u32 %v3089_v47, %v2252_v48  ;;  %v3071_v59 = vld [vmem:[#allocation3 + $0x14] sm:$0xf]  ;;  %v2244_v62 = vld [vmem:[#allocation3 + $0x98] sm:$0xf0] }
  0x35   : > { %929 = vmatpush.bf16.msrb.mxu2 %v2223_v56  ;;  %v2498_v56 = vld [vmem:[#allocation3 + $0x290] sm:$0xf]  ;;  %v3152_v57 = vld [vmem:[#allocation3 + $0x294] sm:$0xf0]  ;;  %v3087_v61 = vld [vmem:[#allocation3 + $0x94] sm:$0xf]  ;;  %v2435_v2 = vor.u32 %v3136_v55, %v2434_v51 }
  0x36   : > { %942 = vmatpush.bf16.msrb.mxu3 %v2287_v60  ;;  %v2180_v60 = vld [vmem:[#allocation3 + $0x18] sm:$0xf0]  ;;  %v2426_v63 = vld [vmem:[#allocation3 + $0x200] sm:$0xf]  ;;  %v3134_v0 = vld [vmem:[#allocation3 + $0x204] sm:$0xf0]  ;;  %v2499_v1 = vor.u32 %v3152_v57, %v2498_v56  ;;  %v2247_v12 = vor.u32 %v3087_v61, %v2244_v62 }
  0x37   : > { %904 = vmatpush.bf16.msrb.mxu0 %v2467_v6  ;;  %v2490_v3 = vld [vmem:[#allocation3 + $0x280] sm:$0xf]  ;;  %v3150_v4 = vld [vmem:[#allocation3 + $0x284] sm:$0xf0]  ;;  %v261_v5 = vshll.u32 %v3437_v49, 16  ;;  %v2183_v6 = vor.u32 %v3071_v59, %v2180_v60  ;;  %v268_v11 = vshll.u32 %v3440_v54, 16  ;;  %v2427_v21 = vor.u32 %v3134_v0, %v2426_v63 }
  0x38   : > { %917 = vmatpush.bf16.msrb.mxu1 %v2531_v7  ;;  %v3069_v7 = vld [vmem:[#allocation3 + $0x4] sm:$0xf]  ;;  %v3115_v17 = vld [vmem:[#allocation3 + $0x174] sm:$0xf]  ;;  %v2356_v18 = vld [vmem:[#allocation3 + $0x178] sm:$0xf0]  ;;  %v2491_v26 = vor.u32 %v3150_v4, %v2490_v3 }
  0x39   : > { %930 = vmatpush.bf16.msrb.mxu2 %v2215_v10  ;;  %v2172_v10 = vld [vmem:[#allocation3 + $0x8] sm:$0xf0]  ;;  %v3085_v13 = vld [vmem:[#allocation3 + $0x84] sm:$0xf]  ;;  %v3131_v19 = vld [vmem:[#allocation3 + $0x1f4] sm:$0xf]  ;;  %v2359_v33 = vor.u32 %v3115_v17, %v2356_v18 }
  0x3a   : > { %943 = vmatpush.bf16.msrb.mxu3 %v2279_v16  ;;  %v2236_v16 = vld [vmem:[#allocation3 + $0x88] sm:$0xf0]  ;;  %v2420_v20 = vld [vmem:[#allocation3 + $0x1f8] sm:$0xf0]  ;;  %v2175_v27 = vor.u32 %v3069_v7, %v2172_v10  ;;  %v3163_v28 = vld [vmem:[#allocation3 + $0x2f4] sm:$0xf] }
  0x3b   : > { %905 = vmatpush.bf16.msrb.mxu0 %v2459_v22  ;;  %v3147_v22 = vld [vmem:[#allocation3 + $0x274] sm:$0xf]  ;;  %v2484_v23 = vld [vmem:[#allocation3 + $0x278] sm:$0xf0]  ;;  %v266_v30 = vshrl.u32 %v3440_v54, 16  ;;  %v270_v31 = vrot.slane %v268_v11, 1  ;;  %v2239_v32 = vor.u32 %v3085_v13, %v2236_v16  ;;  %v2423_v34 = vor.u32 %v3131_v19, %v2420_v20 }
  0x3c   : > { %918 = vmatpush.bf16.msrb.mxu1 %v2523_v24  ;;  %v259_v24 = vshrl.u32 %v3437_v49, 16  ;;  %v3113_v36 = vld [vmem:[#allocation3 + $0x164] sm:$0xf]  ;;  %v2412_v40 = vld [vmem:[#allocation3 + $0x1e8] sm:$0xf0] }
  0x3d   : > { %931 = vmatpush.bf16.msrb.mxu2 %v2207_v25  ;;  %v263_v25 = vrot.slane %v261_v5, 1  ;;  %v3145_v41 = vld [vmem:[#allocation3 + $0x264] sm:$0xf]  ;;  %v2476_v42 = vld [vmem:[#allocation3 + $0x268] sm:$0xf0]  ;;  %v3448_v46 = vor.u32 %v270_v31, %v266_v30 }
  0x3e   : > { %944 = vmatpush.bf16.msrb.mxu3 %v2271_v29  ;;  %v2548_v29 = vld [vmem:[#allocation3 + $0x2f8] sm:$0xf0]  ;;  %v3161_v44 = vld [vmem:[#allocation3 + $0x2e4] sm:$0xf]  ;;  %v2540_v45 = vld [vmem:[#allocation3 + $0x2e8] sm:$0xf0]  ;;  %v2479_v49 = vor.u32 %v3145_v41, %v2476_v42 }
  0x3f   : > { %906 = vmatpush.bf16.msrb.mxu0 %v2451_v35  ;;  %v2487_v35 = vor.u32 %v3147_v22, %v2484_v23  ;;  %v2551_v39 = vor.u32 %v3163_v28, %v2548_v29  ;;  %v2340_v51 = vld [vmem:[#allocation3 + $0x158] sm:$0xf0]  ;;  %v3143_v55 = vld [vmem:[#allocation3 + $0x254] sm:$0xf]  ;;  %v3109_v62 = vld [vmem:[#allocation3 + $0x144] sm:$0xf] }
  0x40   : > { %919 = vmatpush.bf16.msrb.mxu1 %v2515_v37  ;;  %v2348_v37 = vld [vmem:[#allocation3 + $0x168] sm:$0xf0]  ;;  %v2404_v54 = vld [vmem:[#allocation3 + $0x1d8] sm:$0xf0]  ;;  %v3159_v57 = vld [vmem:[#allocation3 + $0x2d4] sm:$0xf] }
  0x41   : > { %932 = vmatpush.bf16.msrb.mxu2 %v2199_v38  ;;  %v3129_v38 = vld [vmem:[#allocation3 + $0x1e4] sm:$0xf]  ;;  %v2351_v47 = vor.u32 %v3113_v36, %v2348_v37  ;;  %v2468_v56 = vld [vmem:[#allocation3 + $0x258] sm:$0xf0]  ;;  %v2332_v63 = vld [vmem:[#allocation3 + $0x148] sm:$0xf0] }
  0x42   : > { %945 = vmatpush.bf16.msrb.mxu3 %v2263_v43  ;;  %v3446_v43 = vor.u32 %v263_v25, %v259_v24  ;;  %v2415_v48 = vor.u32 %v3129_v38, %v2412_v40  ;;  %v2471_v61 = vor.u32 %v3143_v55, %v2468_v56  ;;  %v3125_v0 = vld [vmem:[#allocation3 + $0x1c4] sm:$0xf]  ;;  %v2396_v3 = vld [vmem:[#allocation3 + $0x1c8] sm:$0xf0]  ;;  %v3107_v10 = vld [vmem:[#allocation3 + $0x134] sm:$0xf] }
  0x43   : > { %907 = vmatpush.bf16.msrb.mxu0 %v2443_v50  ;;  %v3111_v50 = vld [vmem:[#allocation3 + $0x154] sm:$0xf]  ;;  %v3141_v4 = vld [vmem:[#allocation3 + $0x244] sm:$0xf]  ;;  %v2399_v7 = vor.u32 %v3125_v0, %v2396_v3  ;;  %v2324_v11 = vld [vmem:[#allocation3 + $0x138] sm:$0xf0] }
  0x44   : > { %920 = vmatpush.bf16.msrb.mxu1 %v2507_v52  ;;  %v3127_v52 = vld [vmem:[#allocation3 + $0x1d4] sm:$0xf]  ;;  %v2343_v59 = vor.u32 %v3111_v50, %v2340_v51  ;;  %v3157_v5 = vld [vmem:[#allocation3 + $0x2c4] sm:$0xf]  ;;  %v2388_v16 = vld [vmem:[#allocation3 + $0x1b8] sm:$0xf0] }
  0x45   : > { %933 = vmatpush.bf16.msrb.mxu2 %v2191_v53  ;;  %v2543_v53 = vor.u32 %v3161_v44, %v2540_v45  ;;  %v2407_v60 = vor.u32 %v3127_v52, %v2404_v54  ;;  %v3139_v17 = vld [vmem:[#allocation3 + $0x234] sm:$0xf]  ;;  %v2452_v18 = vld [vmem:[#allocation3 + $0x238] sm:$0xf0]  ;;  %v3105_v24 = vld [vmem:[#allocation3 + $0x124] sm:$0xf] }
  0x46   : > { %946 = vmatpush.bf16.msrb.mxu3 %v2255_v58  ;;  %v2532_v58 = vld [vmem:[#allocation3 + $0x2d8] sm:$0xf0]  ;;  %v3155_v19 = vld [vmem:[#allocation3 + $0x2b4] sm:$0xf]  ;;  %v2455_v23 = vor.u32 %v3139_v17, %v2452_v18  ;;  %v2316_v25 = vld [vmem:[#allocation3 + $0x128] sm:$0xf0] }
  0x47   : > { %908 = vmatpush.bf16.msrb.mxu0 %v2435_v2  ;;  %v2535_v2 = vor.u32 %v3159_v57, %v2532_v58  ;;  %v2516_v20 = vld [vmem:[#allocation3 + $0x2b8] sm:$0xf0]  ;;  %v2380_v28 = vld [vmem:[#allocation3 + $0x1a8] sm:$0xf0]  ;;  %v3137_v29 = vld [vmem:[#allocation3 + $0x224] sm:$0xf] }
  0x48   : > { %921 = vmatpush.bf16.msrb.mxu1 %v2499_v1  ;;  %v2524_v1 = vld [vmem:[#allocation3 + $0x2c8] sm:$0xf0]  ;;  %v3153_v31 = vld [vmem:[#allocation3 + $0x2a4] sm:$0xf]  ;;  %v3103_v36 = vld [vmem:[#allocation3 + $0x114] sm:$0xf] }
  0x49   : > { %934 = vmatpush.bf16.msrb.mxu2 %v2183_v6  ;;  %v2335_v6 = vor.u32 %v3109_v62, %v2332_v63  ;;  %v2527_v13 = vor.u32 %v3157_v5, %v2524_v1  ;;  %v2444_v30 = vld [vmem:[#allocation3 + $0x228] sm:$0xf0]  ;;  %v2308_v37 = vld [vmem:[#allocation3 + $0x118] sm:$0xf0]  ;;  %v3119_v38 = vld [vmem:[#allocation3 + $0x194] sm:$0xf] }
  0x4a   : > { %947 = vmatpush.bf16.msrb.mxu3 %v2247_v12  ;;  %v3123_v12 = vld [vmem:[#allocation3 + $0x1b4] sm:$0xf]  ;;  %v2372_v40 = vld [vmem:[#allocation3 + $0x198] sm:$0xf0]  ;;  %v3101_v50 = vld [vmem:[#allocation3 + $0x104] sm:$0xf] }
  0x4b   : > { %909 = vmatpush.bf16.msrb.mxu0 %v2427_v21  ;;  %v2327_v21 = vor.u32 %v3107_v10, %v2324_v11  ;;  %v2391_v22 = vor.u32 %v3123_v12, %v2388_v16  ;;  %v3135_v41 = vld [vmem:[#allocation3 + $0x214] sm:$0xf]  ;;  %v2436_v42 = vld [vmem:[#allocation3 + $0x218] sm:$0xf0]  ;;  %v2300_v51 = vld [vmem:[#allocation3 + $0x108] sm:$0xf0] }
  0x4c   : > { %922 = vmatpush.bf16.msrb.mxu1 %v2491_v26  ;;  %v3121_v26 = vld [vmem:[#allocation3 + $0x1a4] sm:$0xf]  ;;  %v3151_v44 = vld [vmem:[#allocation3 + $0x294] sm:$0xf]  ;;  %v2500_v45 = vld [vmem:[#allocation3 + $0x298] sm:$0xf0] }
  0x4d   : > { %935 = vmatpush.bf16.msrb.mxu2 %v2175_v27  ;;  %v2519_v27 = vor.u32 %v3155_v19, %v2516_v20  ;;  %v3117_v52 = vld [vmem:[#allocation3 + $0x184] sm:$0xf]  ;;  %v2364_v54 = vld [vmem:[#allocation3 + $0x188] sm:$0xf0]  ;;  %v2610_v63 = vld [vmem:[%s4336_s3 + $0x70] sm:$0xf] }
  0x4e   : > { %948 = vmatpush.bf16.msrb.mxu3 %v2239_v32  ;;  %910 = vmatmul.bf16.vlgmr.msrb.gmra.mxu0 %v3446_v43  ;;  %v2508_v32 = vld [vmem:[#allocation3 + $0x2a8] sm:$0xf0]  ;;  %v3133_v55 = vld [vmem:[#allocation3 + $0x204] sm:$0xf]  ;;  %v3180_v0 = vld [vmem:[%s4336_s3 + $0x74] sm:$0xf0] }
  0x4f   : > { %954 = vmatpush.bf16.msra.mxu0 %v2359_v33  ;;  %923 = vmatmul.bf16.vlgmr.msrb.gmra.mxu1 %v3448_v46  ;;  %v2319_v33 = vor.u32 %v3105_v24, %v2316_v25  ;;  %v2428_v56 = vld [vmem:[#allocation3 + $0x208] sm:$0xf0]  ;;  %v3149_v57 = vld [vmem:[#allocation3 + $0x284] sm:$0xf]  ;;  %v2611_v3 = vor.u32 %v3180_v0, %v2610_v63  ;;  %v2666_v5 = vld [vmem:[%s4336_s3 + $0xe0] sm:$0xf] }
  0x50   : > { %967 = vmatpush.bf16.msra.mxu1 %v2423_v34  ;;  %936 = vmatmul.bf16.vlgmr.msrb.gmra.mxu2 %v3421_v8  ;;  %v2460_v8 = vld [vmem:[#allocation3 + $0x248] sm:$0xf0]  ;;  %v2383_v34 = vor.u32 %v3121_v26, %v2380_v28  ;;  %v3176_v10 = vld [vmem:[%s4336_s3 + $0x54] sm:$0xf0]  ;;  %v2658_v11 = vld [vmem:[%s4336_s3 + $0xd0] sm:$0xf] }
  0x51   : > { %980 = vmatpush.bf16.msra.mxu2 %v2487_v35  ;;  %949 = vmatmul.bf16.vlgmr.msrb.gmra.mxu3 %v3425_v9  ;;  %v2463_v9 = vor.u32 %v3141_v4, %v2460_v8  ;;  %v2447_v35 = vor.u32 %v3137_v29, %v2444_v30  ;;  %v2492_v58 = vld [vmem:[#allocation3 + $0x288] sm:$0xf0]  ;;  %v3196_v4 = vld [vmem:[%s4336_s3 + $0xf4] sm:$0xf0]  ;;  %v3178_v8 = vld [vmem:[%s4336_s3 + $0x64] sm:$0xf0] }
  0x52   : > { %993 = vmatpush.bf16.msra.mxu3 %v2551_v39  ;;  %v2511_v39 = vor.u32 %v3153_v31, %v2508_v32  ;;  %v2495_v62 = vor.u32 %v3149_v57, %v2492_v58  ;;  %v2738_v19 = vld [vmem:[%s4336_s3 + $0x170] sm:$0xf]  ;;  %v3212_v20 = vld [vmem:[%s4336_s3 + $0x174] sm:$0xf0]  ;;  %v2586_v24 = vld [vmem:[%s4336_s3 + $0x40] sm:$0xf] }
  0x53   : > { %955 = vmatpush.bf16.msra.mxu0 %v2351_v47  ;;  %v2311_v47 = vor.u32 %v3103_v36, %v2308_v37  ;;  %v3174_v25 = vld [vmem:[%s4336_s3 + $0x44] sm:$0xf0]  ;;  %v2794_v29 = vld [vmem:[%s4336_s3 + $0x1e0] sm:$0xf]  ;;  %v2578_v37 = vld [vmem:[%s4336_s3 + $0x30] sm:$0xf] }
  0x54   : > { %968 = vmatpush.bf16.msra.mxu1 %v2415_v48  ;;  %v2375_v48 = vor.u32 %v3119_v38, %v2372_v40  ;;  %v3210_v28 = vld [vmem:[%s4336_s3 + $0x164] sm:$0xf0]  ;;  %v2587_v30 = vor.u32 %v3174_v25, %v2586_v24  ;;  %v3172_v38 = vld [vmem:[%s4336_s3 + $0x34] sm:$0xf0]  ;;  %v2778_v57 = vld [vmem:[%s4336_s3 + $0x1c0] sm:$0xf] }
  0x55   : > { %981 = vmatpush.bf16.msra.mxu2 %v2479_v49  ;;  %v2439_v49 = vor.u32 %v3135_v41, %v2436_v42  ;;  %v3226_v32 = vld [vmem:[%s4336_s3 + $0x1e4] sm:$0xf0]  ;;  %v2579_v41 = vor.u32 %v3172_v38, %v2578_v37  ;;  %v3188_v42 = vld [vmem:[%s4336_s3 + $0xb4] sm:$0xf0]  ;;  %v2866_v24 = vld [vmem:[%s4336_s3 + $0x270] sm:$0xf] }
  0x56   : > { %994 = vmatpush.bf16.msra.mxu3 %v2543_v53  ;;  %v2503_v53 = vor.u32 %v3151_v44, %v2500_v45  ;;  %v3222_v58 = vld [vmem:[%s4336_s3 + $0x1c4] sm:$0xf0]  ;;  %v3244_v25 = vld [vmem:[%s4336_s3 + $0x274] sm:$0xf0]  ;;  %vm1010_vm1 = vsmask.f32 256 }
  0x57   : > { %956 = vmatpush.bf16.msra.mxu0 %v2343_v59  ;;  %v2303_v59 = vor.u32 %v3101_v50, %v2300_v51  ;;  %v3208_v50 = vld [vmem:[%s4336_s3 + $0x154] sm:$0xf0]  ;;  %v2786_v51 = vld [vmem:[%s4336_s3 + $0x1d0] sm:$0xf]  ;;  %v3186_v63 = vld [vmem:[%s4336_s3 + $0xa4] sm:$0xf0]  ;;  %v2779_v0 = vor.u32 %v3222_v58, %v2778_v57 }
  0x58   : > { %969 = vmatpush.bf16.msra.mxu1 %v2407_v60  ;;  %v2367_v60 = vor.u32 %v3117_v52, %v2364_v54  ;;  %v2714_v54 = vld [vmem:[%s4336_s3 + $0x140] sm:$0xf]  ;;  %v3216_v57 = vld [vmem:[%s4336_s3 + $0x194] sm:$0xf0]  ;;  %vm1013_vm3 = vsmask.f32 4352  ;;  %vm3715_vm4 = vmand %vm1009_vm0, %vm1010_vm1 }
  0x59   : > { %982 = vmatpush.bf16.msra.mxu2 %v2471_v61  ;;  %v2431_v61 = vor.u32 %v3133_v55, %v2428_v56  ;;  %v3206_v55 = vld [vmem:[%s4336_s3 + $0x144] sm:$0xf0]  ;;  %v3256_v58 = vld [vmem:[%s4336_s3 + $0x2d4] sm:$0xf0]  ;;  %vm1019_vm5 = vsmask.f32 7938  ;;  %vm3723_vm6 = vmand %vm1012_vm2, %vm1013_vm3 }
  0x5a   : > { %995 = vmatpush.bf16.msra.mxu3 %v2535_v2  ;;  %v2674_v2 = vld [vmem:[%s4336_s3 + $0xf0] sm:$0xf]  ;;  %vm1021_vm7 = vsmask.f32 7954  ;;  %vm1015_vm8 = vmor %vm3723_vm6, %vm3715_vm4 }
  0x5b   : > { %957 = vmatpush.bf16.msra.mxu0 %v2335_v6  ;;  %v3194_v6 = vld [vmem:[%s4336_s3 + $0xe4] sm:$0xf0]  ;;  %vm3744_vm9 = vmand %vm1009_vm0, %vm1019_vm5 }
  0x5c   : > { %970 = vmatpush.bf16.msra.mxu1 %v2399_v7  ;;  %v2667_v7 = vor.u32 %v3194_v6, %v2666_v5  ;;  %v2562_v5 = vld [vmem:[%s4336_s3 + $0x10] sm:$0xf]  ;;  %vm1022_vm10 = vmand %vm1012_vm2, %vm1021_vm7 }
  0x5d   : > { %983 = vmatpush.bf16.msra.mxu2 %v2463_v9  ;;  %v2594_v9 = vld [vmem:[%s4336_s3 + $0x50] sm:$0xf]  ;;  %vm1023_vm11 = vmor %vm1022_vm10, %vm3744_vm9 }
  0x5e   : > { %996 = vmatpush.bf16.msra.mxu3 %v2527_v13  ;;  %v2595_v12 = vor.u32 %v3176_v10, %v2594_v9  ;;  %v3192_v13 = vld [vmem:[%s4336_s3 + $0xd4] sm:$0xf0]  ;;  %v2626_v9 = vld [vmem:[%s4336_s3 + $0x90] sm:$0xf]  ;;  %vm3896_vm14 = vmand %vm1037_vm12, %vm1019_vm5 }
  0x5f   : > { %958 = vmatpush.bf16.msra.mxu0 %v2327_v21  ;;  %v2659_v17 = vor.u32 %v3192_v13, %v2658_v11  ;;  %v2802_v21 = vld [vmem:[%s4336_s3 + $0x1f0] sm:$0xf]  ;;  %v3184_v10 = vld [vmem:[%s4336_s3 + $0x94] sm:$0xf0]  ;;  %vm1040_vm15 = vmand %vm1039_vm13, %vm1021_vm7 }
  0x60   : > { %971 = vmatpush.bf16.msra.mxu1 %v2391_v22  ;;  %v2739_v22 = vor.u32 %v3212_v20, %v2738_v19  ;;  %v2627_v13 = vor.u32 %v3184_v10, %v2626_v9  ;;  %v2554_v19 = vld [vmem:[%s4336_s3] sm:$0xf]  ;;  %v3166_v20 = vld [vmem:[%s4336_s3 + $0x4] sm:$0xf0]  ;;  %vm1041_vm0 = vmor %vm1040_vm15, %vm3896_vm14 }
  0x61   : > { %984 = vmatpush.bf16.msra.mxu2 %v2455_v23  ;;  %v3228_v23 = vld [vmem:[%s4336_s3 + $0x1f4] sm:$0xf0]  ;;  %v2604_v9 = vld [vmem:[%s4336_s3 + $0x68] sm:$0xf0] }
  0x62   : > { %997 = vmatpush.bf16.msra.mxu3 %v2519_v27  ;;  %v2803_v26 = vor.u32 %v3228_v23, %v2802_v21  ;;  %v2730_v27 = vld [vmem:[%s4336_s3 + $0x160] sm:$0xf]  ;;  %v3182_v23 = vld [vmem:[%s4336_s3 + $0x84] sm:$0xf0] }
  0x63   : > { %959 = vmatpush.bf16.msra.mxu0 %v2319_v33  ;;  %v2731_v31 = vor.u32 %v3210_v28, %v2730_v27  ;;  %v2650_v33 = vld [vmem:[%s4336_s3 + $0xc0] sm:$0xf]  ;;  %v2867_v27 = vor.u32 %v3244_v25, %v2866_v24  ;;  %v2930_v28 = vld [vmem:[%s4336_s3 + $0x2f0] sm:$0xf]  ;;  %v3274_v25 = vld [vmem:[%s4336_s3 + $0x364] sm:$0xf0] }
  0x64   : > { %972 = vmatpush.bf16.msra.mxu1 %v2383_v34  ;;  %v3190_v34 = vld [vmem:[%s4336_s3 + $0xc4] sm:$0xf0]  ;;  %v2618_v21 = vld [vmem:[%s4336_s3 + $0x80] sm:$0xf] }
  0x65   : > { %985 = vmatpush.bf16.msra.mxu2 %v2447_v35  ;;  %v2795_v35 = vor.u32 %v3226_v32, %v2794_v29  ;;  %v2651_v36 = vor.u32 %v3190_v34, %v2650_v33  ;;  %v3260_v29 = vld [vmem:[%s4336_s3 + $0x2f4] sm:$0xf0]  ;;  %v3242_v32 = vld [vmem:[%s4336_s3 + $0x264] sm:$0xf0]  ;;  %v2922_v33 = vld [vmem:[%s4336_s3 + $0x2e0] sm:$0xf] }
  0x66   : > { %998 = vmatpush.bf16.msra.mxu3 %v2511_v39  ;;  %v2642_v39 = vld [vmem:[%s4336_s3 + $0xb0] sm:$0xf]  ;;  %v2698_v34 = vld [vmem:[%s4336_s3 + $0x120] sm:$0xf] }
  0x67   : > { %960 = vmatpush.bf16.msra.mxu0 %v2311_v47  ;;  %v2643_v47 = vor.u32 %v3188_v42, %v2642_v39  ;;  %v3218_v39 = vld [vmem:[%s4336_s3 + $0x1a4] sm:$0xf0] }
  0x68   : > { %973 = vmatpush.bf16.msra.mxu1 %v2375_v48 }
  0x69   : > { %986 = vmatpush.bf16.msra.mxu2 %v2439_v49  ;;  %v2722_v49 = vld [vmem:[%s4336_s3 + $0x150] sm:$0xf] }
  0x6a   : > { %999 = vmatpush.bf16.msra.mxu3 %v2503_v53  ;;  %v2723_v52 = vor.u32 %v3208_v50, %v2722_v49  ;;  %v3224_v53 = vld [vmem:[%s4336_s3 + $0x1d4] sm:$0xf0]  ;;  %v2850_v49 = vld [vmem:[%s4336_s3 + $0x250] sm:$0xf] }
  0x6b   : > { %961 = vmatpush.bf16.msra.mxu0 %v2303_v59  ;;  %v2787_v56 = vor.u32 %v3224_v53, %v2786_v51  ;;  %v2570_v59 = vld [vmem:[%s4336_s3 + $0x20] sm:$0xf]  ;;  %v3240_v50 = vld [vmem:[%s4336_s3 + $0x254] sm:$0xf0]  ;;  %v2914_v51 = vld [vmem:[%s4336_s3 + $0x2d0] sm:$0xf] }
  0x6c   : > { %974 = vmatpush.bf16.msra.mxu1 %v2367_v60  ;;  %v2715_v60 = vor.u32 %v3206_v55, %v2714_v54  ;;  %v3200_v53 = vld [vmem:[%s4336_s3 + $0x114] sm:$0xf0]  ;;  %v2754_v54 = vld [vmem:[%s4336_s3 + $0x190] sm:$0xf]  ;;  %v2851_v55 = vor.u32 %v3240_v50, %v2850_v49 }
  0x6d   : > { %987 = vmatpush.bf16.msra.mxu2 %v2431_v61  ;;  %v3170_v61 = vld [vmem:[%s4336_s3 + $0x24] sm:$0xf0]  ;;  %v2898_v49 = vld [vmem:[%s4336_s3 + $0x2b0] sm:$0xf] }
  0x6e   : > { %1000 = vmatpush.bf16.msra.mxu3 %v2495_v62  ;;  %962 = vmatmul.bf16.vlgmr.msra.gmra.mxu0 %v3427_v14  ;;  %v2634_v62 = vld [vmem:[%s4336_s3 + $0xa0] sm:$0xf] }
  0x6f   : > { %975 = vmatmul.bf16.vlgmr.msra.gmra.mxu1 %v3429_v15  ;;  %1864 = vmatpush.bf16.msrb.mxu0 %v2611_v3  ;;  %v2635_v3 = vor.u32 %v3186_v63, %v2634_v62  ;;  %v3238_v62 = vld [vmem:[%s4336_s3 + $0x244] sm:$0xf0]  ;;  %v2682_v63 = vld [vmem:[%s4336_s3 + $0x100] sm:$0xf] }
  0x70   : > { %988 = vmatmul.bf16.vlgmr.msra.gmra.mxu2 %v3446_v43  ;;  %v2675_v43 = vor.u32 %v3196_v4, %v2674_v2  ;;  %v2571_v2 = vor.u32 %v3170_v61, %v2570_v59  ;;  %v2706_v4 = vld [vmem:[%s4336_s3 + $0x130] sm:$0xf]  ;;  %v2755_v59 = vor.u32 %v3216_v57, %v2754_v54  ;;  %v2842_v61 = vld [vmem:[%s4336_s3 + $0x240] sm:$0xf] }
  0x71   : > { %1001 = vmatmul.bf16.vlgmr.msra.gmra.mxu3 %v3448_v46  ;;  %v2602_v46 = vld [vmem:[%s4336_s3 + $0x60] sm:$0xf]  ;;  %1890 = vmatpush.bf16.msrb.mxu2 %v2739_v22  ;;  %v2555_v22 = vor.u32 %v3166_v20, %v2554_v19  ;;  %v3292_v20 = vld [vmem:[%s4336_s3 + $0x3f4] sm:$0xf0] }
  0x72   : > { %1877 = vmatpush.bf16.msrb.mxu1 %v2675_v43  ;;  %v2603_v1 = vor.u32 %v3178_v8, %v2602_v46  ;;  %1903 = vmatpush.bf16.msrb.mxu3 %v2803_v26  ;;  %v3204_v43 = vld [vmem:[%s4336_s3 + $0x134] sm:$0xf0]  ;;  %v2770_v46 = vld [vmem:[%s4336_s3 + $0x1b0] sm:$0xf]  ;;  %v2619_v26 = vor.u32 %v3182_v23, %v2618_v21  ;;  %v2986_v21 = vld [vmem:[%s4336_s3 + $0x360] sm:$0xf] }
  0x73   : > { %v3220_v8 = vld [vmem:[%s4336_s3 + $0x1b4] sm:$0xf0]  ;;  %v2970_v54 = vld [vmem:[%s4336_s3 + $0x340] sm:$0xf] }
  0x74   : > { %1865 = vmatpush.bf16.msrb.mxu0 %v2603_v1  ;;  %v3168_v1 = vld [vmem:[%s4336_s3 + $0x14] sm:$0xf0]  ;;  %v2810_v23 = vld [vmem:[%s4336_s3 + $0x200] sm:$0xf] }
  0x75   : > { %1891 = vmatpush.bf16.msrb.mxu2 %v2731_v31  ;;  %v2858_v31 = vld [vmem:[%s4336_s3 + $0x260] sm:$0xf] }
  0x76   : > { %1878 = vmatpush.bf16.msrb.mxu1 %v2667_v7  ;;  %1904 = vmatpush.bf16.msrb.mxu3 %v2795_v35  ;;  %v2563_v7 = vor.u32 %v3168_v1, %v2562_v5  ;;  %v3202_v35 = vld [vmem:[%s4336_s3 + $0x124] sm:$0xf0]  ;;  %v2859_v37 = vor.u32 %v3242_v32, %v2858_v31  ;;  %v3276_v5 = vld [vmem:[%s4336_s3 + $0x374] sm:$0xf0]  ;;  %v2834_v32 = vld [vmem:[%s4336_s3 + $0x230] sm:$0xf] }
  0x77   : > { %v2699_v38 = vor.u32 %v3202_v35, %v2698_v34  ;;  %v3254_v31 = vld [vmem:[%s4336_s3 + $0x2c4] sm:$0xf0] }
  0x78   : > { %1866 = vmatpush.bf16.msrb.mxu0 %v2595_v12  ;;  %v2707_v12 = vor.u32 %v3204_v43, %v2706_v4 }
  0x79   : > { %1892 = vmatpush.bf16.msrb.mxu2 %v2723_v52  ;;  %v2690_v52 = vld [vmem:[%s4336_s3 + $0x110] sm:$0xf] }
  0x7a   : > { %1879 = vmatpush.bf16.msrb.mxu1 %v2659_v17  ;;  %1905 = vmatpush.bf16.msrb.mxu3 %v2787_v56  ;;  %v2771_v17 = vor.u32 %v3220_v8, %v2770_v46  ;;  %v2691_v56 = vor.u32 %v3200_v53, %v2690_v52  ;;  %v3214_v46 = vld [vmem:[%s4336_s3 + $0x184] sm:$0xf0]  ;;  %v2994_v8 = vld [vmem:[%s4336_s3 + $0x370] sm:$0xf]  ;;  %v3252_v52 = vld [vmem:[%s4336_s3 + $0x2b4] sm:$0xf0] }
  0x7b   : > { %v2995_v19 = vor.u32 %v3276_v5, %v2994_v8  ;;  %v2899_v53 = vor.u32 %v3252_v52, %v2898_v49  ;;  %v2818_v5 = vld [vmem:[%s4336_s3 + $0x210] sm:$0xf]  ;;  %v3002_v49 = vld [vmem:[%s4336_s3 + $0x380] sm:$0xf] }
  0x7c   : > { %1867 = vmatpush.bf16.msrb.mxu0 %v2587_v30  ;;  %v2931_v30 = vor.u32 %v3260_v29, %v2930_v28  ;;  %v3290_v28 = vld [vmem:[%s4336_s3 + $0x3e4] sm:$0xf0]  ;;  %v2906_v29 = vld [vmem:[%s4336_s3 + $0x2c0] sm:$0xf] }
  0x7d   : > { %1893 = vmatpush.bf16.msrb.mxu2 %v2715_v60  ;;  %v2915_v60 = vor.u32 %v3256_v58, %v2914_v51  ;;  %v2907_v35 = vor.u32 %v3254_v31, %v2906_v29  ;;  %v3034_v58 = vld [vmem:[%s4336_s3 + $0x3c0] sm:$0xf] }
  0x7e   : > { %1880 = vmatpush.bf16.msrb.mxu1 %v2651_v36  ;;  %1906 = vmatpush.bf16.msrb.mxu3 %v2779_v0  ;;  %v2762_v36 = vld [vmem:[%s4336_s3 + $0x1a0] sm:$0xf]  ;;  %v3198_v0 = vld [vmem:[%s4336_s3 + $0x104] sm:$0xf0] }
  0x7f   : > { %v2683_v43 = vor.u32 %v3198_v0, %v2682_v63 }
  0x80   : > { %1868 = vmatpush.bf16.msrb.mxu0 %v2579_v41  ;;  %v3258_v41 = vld [vmem:[%s4336_s3 + $0x2e4] sm:$0xf0] }
  0x81   : > { %1894 = vmatpush.bf16.msrb.mxu2 %v2707_v12  ;;  %v3193_v12 = vld [vmem:[%s4336_s3 + $0xe4] sm:$0xf] }
  0x82   : > { %1881 = vmatpush.bf16.msrb.mxu1 %v2643_v47  ;;  %1907 = vmatpush.bf16.msrb.mxu3 %v2771_v17  ;;  %v2923_v47 = vor.u32 %v3258_v41, %v2922_v33  ;;  %v1024_v17 = vld [vmem:[#allocation2 + $0x8] sm:$0x11]  ;;  %v3042_v41 = vld [vmem:[%s4336_s3 + $0x3d0] sm:$0xf] }
  0x83   : > { %v1025_v34 = vsel %vm1023_vm11, 0, %v1024_v17  ;;  %v2954_v17 = vld [vmem:[%s4336_s3 + $0x320] sm:$0xf] }
  0x84   : > { %1869 = vmatpush.bf16.msrb.mxu0 %v2571_v2  ;;  %v2746_v2 = vld [vmem:[%s4336_s3 + $0x180] sm:$0xf]  ;;  %1026 = vst [vmem:[#allocation2 + $0x8] sm:$0x11] %v1025_v34  ;;  %v3264_v34 = vld [vmem:[%s4336_s3 + $0x314] sm:$0xf0] }
  0x85   : > { %1895 = vmatpush.bf16.msrb.mxu2 %v2699_v38  ;;  %v2747_v10 = vor.u32 %v3214_v46, %v2746_v2  ;;  %v3268_v2 = vld [vmem:[%s4336_s3 + $0x334] sm:$0xf0] }
  0x86   : > { %1882 = vmatpush.bf16.msrb.mxu1 %v2635_v3  ;;  %v2843_v3 = vor.u32 %v3238_v62, %v2842_v61  ;;  %v3234_v61 = vld [vmem:[%s4336_s3 + $0x224] sm:$0xf0]  ;;  %v2890_v62 = vld [vmem:[%s4336_s3 + $0x2a0] sm:$0xf]  ;;  %v3284_v46 = vld [vmem:[%s4336_s3 + $0x3b4] sm:$0xf0] }
  0x88   : > { %1870 = vmatpush.bf16.msrb.mxu0 %v2563_v7 }
  0x89   : > { %1896 = vmatpush.bf16.msrb.mxu2 %v2691_v56  ;;  %v2826_v56 = vld [vmem:[%s4336_s3 + $0x220] sm:$0xf] }
  0x8a   : > { %1883 = vmatpush.bf16.msrb.mxu1 %v2627_v13  ;;  %v1016_v13 = vld [vmem:[#allocation2] sm:$0x11]  ;;  %v2827_v0 = vor.u32 %v3234_v61, %v2826_v56 }
  0x8c   : > { %1871 = vmatpush.bf16.msrb.mxu0 %v2555_v22  ;;  %v1017_v22 = vsel %vm1015_vm8, 0, %v1016_v13  ;;  %v3248_v13 = vld [vmem:[%s4336_s3 + $0x294] sm:$0xf0] }
  0x8d   : > { %1897 = vmatpush.bf16.msrb.mxu2 %v2683_v43  ;;  %1018 = vst [vmem:[#allocation2] sm:$0x11] %v1017_v22  ;;  %v3026_v43 = vld [vmem:[%s4336_s3 + $0x3b0] sm:$0xf]  ;;  %v3282_v22 = vld [vmem:[%s4336_s3 + $0x3a4] sm:$0xf0] }
  0x8e   : > { %1884 = vmatpush.bf16.msrb.mxu1 %v2619_v26  ;;  %v3050_v26 = vld [vmem:[%s4336_s3 + $0x3e0] sm:$0xf] }
  0x90   : > { %1916 = vmatpush.bf16.msra.mxu0 %v2867_v27  ;;  %v2987_v27 = vor.u32 %v3274_v25, %v2986_v21  ;;  %v2874_v25 = vld [vmem:[%s4336_s3 + $0x280] sm:$0xf] }
  0x91   : > { %1942 = vmatpush.bf16.msra.mxu2 %v2995_v19  ;;  %v3266_v19 = vld [vmem:[%s4336_s3 + $0x324] sm:$0xf0] }
  0x92   : > { %1929 = vmatpush.bf16.msra.mxu1 %v2931_v30  ;;  %v3051_v30 = vor.u32 %v3290_v28, %v3050_v26  ;;  %v3246_v26 = vld [vmem:[%s4336_s3 + $0x284] sm:$0xf0] }
  0x94   : > { %1917 = vmatpush.bf16.msra.mxu0 %v2859_v37  ;;  %v3272_v37 = vld [vmem:[%s4336_s3 + $0x354] sm:$0xf0] }
  0x95   : > { %1943 = vmatpush.bf16.msra.mxu2 %v2987_v27  ;;  %v2955_v27 = vor.u32 %v3266_v19, %v2954_v17 }
  0x96   : > { %1930 = vmatpush.bf16.msra.mxu1 %v2923_v47  ;;  %v3236_v47 = vld [vmem:[%s4336_s3 + $0x234] sm:$0xf0] }
  0x97   : > { %v2835_v51 = vor.u32 %v3236_v47, %v2834_v32  ;;  %v2875_v32 = vor.u32 %v3246_v26, %v2874_v25  ;;  %v3175_v26 = vld [vmem:[%s4336_s3 + $0x54] sm:$0xf] }
  0x98   : > { %1918 = vmatpush.bf16.msra.mxu0 %v2851_v55  ;;  %v3270_v55 = vld [vmem:[%s4336_s3 + $0x344] sm:$0xf0] }
  0x99   : > { %v2971_v57 = vor.u32 %v3270_v55, %v2970_v54 }
  0x9a   : > { %1931 = vmatpush.bf16.msra.mxu1 %v2915_v60  ;;  %v3286_v60 = vld [vmem:[%s4336_s3 + $0x3c4] sm:$0xf0] }
  0x9b   : > { %v3035_v63 = vor.u32 %v3286_v60, %v3034_v58 }
  0x9c   : > { %1919 = vmatpush.bf16.msra.mxu0 %v2843_v3 }
  0x9e   : > { %1932 = vmatpush.bf16.msra.mxu1 %v2907_v35 }
  0xa0   : > { %1920 = vmatpush.bf16.msra.mxu0 %v2835_v51 }
  0xa2   : > { %1933 = vmatpush.bf16.msra.mxu1 %v2899_v53 }
  0xa4   : > { %1921 = vmatpush.bf16.msra.mxu0 %v2827_v0 }
  0xab   : > { %v3494_v16 = vpop.f32.mrf.mxu0 }
  0xac   : > { %v3496_v18 = vpop.f32.mrf.mxu1 }
  0xb3   : > { %v3543_v40 = vpop.f32.mrf.mxu2  ;;  %v861_v44 = vpop.f32.mrf.mxu0 }
  0xb4   : > { %v3548_v45 = vpop.f32.mrf.mxu3  ;;  %v874_v48 = vpop.f32.mrf.mxu1  ;;  %v2763_v44 = vor.u32 %v3218_v39, %v2762_v36  ;;  %v2978_v36 = vld [vmem:[%s4336_s3 + $0x350] sm:$0xf] }
  0xb5   : > { %v2979_v39 = vor.u32 %v3272_v37, %v2978_v36 }
  0xb6   : > { %1908 = vmatpush.bf16.msrb.mxu3 %v2763_v44  ;;  %v3288_v44 = vld [vmem:[%s4336_s3 + $0x3d4] sm:$0xf0] }
  0xb7   : > { %v3043_v50 = vor.u32 %v3288_v44, %v3042_v41  ;;  %1944 = vmatpush.bf16.msra.mxu2 %v2979_v39  ;;  %v2938_v39 = vld [vmem:[%s4336_s3 + $0x300] sm:$0xf]  ;;  %v3262_v41 = vld [vmem:[%s4336_s3 + $0x304] sm:$0xf0] }
  0xb8   : > { %v2939_v51 = vor.u32 %v3262_v41, %v2938_v39 }
  0xba   : > { %1909 = vmatpush.bf16.msrb.mxu3 %v2755_v59  ;;  %v873_v59 = vadd.f32 %v3496_v18, %v3494_v16  ;;  %v3250_v16 = vld [vmem:[%s4336_s3 + $0x2a4] sm:$0xf0]  ;;  %v2962_v18 = vld [vmem:[%s4336_s3 + $0x330] sm:$0xf] }
  0xbb   : > { %v887_v6 = vpop.f32.mrf.mxu2  ;;  %v2891_v3 = vor.u32 %v3250_v16, %v2890_v62  ;;  %1945 = vmatpush.bf16.msra.mxu2 %v2971_v57  ;;  %v2963_v8 = vor.u32 %v3268_v2, %v2962_v18  ;;  %v1042_v2 = vld [vmem:[#allocation2] sm:$0xff] }
  0xbc   : > { %v900_v11 = vpop.f32.mrf.mxu3 }
  0xbd   : > { %v3058_v11 = vld [vmem:[%s4336_s3 + $0x3f0] sm:$0xf]  ;;  %1934 = vmatpush.bf16.msra.mxu1 %v2891_v3  ;;  %v1045_v3 = vld [vmem:[#allocation2 + $0x8] sm:$0x11] }
  0xbe   : > { %1910 = vmatpush.bf16.msrb.mxu3 %v2747_v10  ;;  %v3059_v24 = vor.u32 %v3292_v20, %v3058_v11  ;;  %v886_v10 = vadd.f32 %v3543_v40, %v873_v59  ;;  %v3027_v20 = vor.u32 %v3284_v46, %v3026_v43  ;;  %v3018_v40 = vld [vmem:[%s4336_s3 + $0x3a0] sm:$0xf] }
  0xbf   : > { %1946 = vmatpush.bf16.msra.mxu2 %v2963_v8  ;;  %v3019_v36 = vor.u32 %v3282_v22, %v3018_v40  ;;  %v3179_v8 = vld [vmem:[%s4336_s3 + $0x74] sm:$0xf] }
  0xc0   : > { %v899_v29 = vadd.f32 %v3548_v45, %v886_v10  ;;  %v3010_v45 = vld [vmem:[%s4336_s3 + $0x390] sm:$0xf] }
  0xc2   : > { %1955 = vmatpush.bf16.msra.mxu3 %v3059_v24  ;;  %v3230_v24 = vld [vmem:[%s4336_s3 + $0x204] sm:$0xf0] }
  0xc3   : > { %v2811_v28 = vor.u32 %v3230_v24, %v2810_v23  ;;  %1947 = vmatpush.bf16.msra.mxu2 %v2955_v27  ;;  %v2668_v23 = vld [vmem:[%s4336_s3 + $0xe8] sm:$0xf0]  ;;  %v2596_v27 = vld [vmem:[%s4336_s3 + $0x58] sm:$0xf0] }
  0xc4   : > { %v2671_v25 = vor.u32 %v3193_v12, %v2668_v23  ;;  %v3223_v12 = vld [vmem:[%s4336_s3 + $0x1d4] sm:$0xf]  ;;  %v2788_v23 = vld [vmem:[%s4336_s3 + $0x1d8] sm:$0xf0] }
  0xc6   : > { %1956 = vmatpush.bf16.msra.mxu3 %v3051_v30 }
  0xca   : > { %1957 = vmatpush.bf16.msra.mxu3 %v3043_v50 }
  0xcb   : > { %v3658_v42 = vpop.f32.mrf.mxu0 }
  0xcc   : > { %v3660_v48 = vpop.f32.mrf.mxu1 }
  0xce   : > { %1958 = vmatpush.bf16.msra.mxu3 %v3035_v63 }
  0xd2   : > { %1959 = vmatpush.bf16.msra.mxu3 %v3027_v20 }
  0xd3   : > { %v3701_v4 = vpop.f32.mrf.mxu2  ;;  %v913_v6 = vpop.f32.mrf.mxu0 }
  0xd4   : > { %v3712_v1 = vpop.f32.mrf.mxu3  ;;  %v926_v7 = vpop.f32.mrf.mxu1  ;;  %v3232_v6 = vld [vmem:[%s4336_s3 + $0x214] sm:$0xf0] }
  0xd5   : > { %v2882_v7 = vld [vmem:[%s4336_s3 + $0x290] sm:$0xf]  ;;  %v2819_v11 = vor.u32 %v3232_v6, %v2818_v5  ;;  %v951_v30 = vadd.f32 %v3712_v1, %v3701_v4  ;;  %v3280_v4 = vld [vmem:[%s4336_s3 + $0x394] sm:$0xf0]  ;;  %v2612_v5 = vld [vmem:[%s4336_s3 + $0x78] sm:$0xf0] }
  0xd6   : > { %v2883_v21 = vor.u32 %v3248_v13, %v2882_v7  ;;  %1960 = vmatpush.bf16.msra.mxu3 %v3019_v36  ;;  %v3011_v44 = vor.u32 %v3280_v4, %v3010_v45  ;;  %v3195_v6 = vld [vmem:[%s4336_s3 + $0xf4] sm:$0xf]  ;;  %v2676_v7 = vld [vmem:[%s4336_s3 + $0xf8] sm:$0xf0]  ;;  %v2615_v19 = vor.u32 %v3179_v8, %v2612_v5  ;;  %v3173_v36 = vld [vmem:[%s4336_s3 + $0x44] sm:$0xf] }
  0xd7   : > { %1922 = vmatpush.bf16.msra.mxu0 %v2819_v11  ;;  %v2679_v20 = vor.u32 %v3195_v6, %v2676_v7  ;;  %v3189_v45 = vld [vmem:[%s4336_s3 + $0xc4] sm:$0xf]  ;;  %v2652_v4 = vld [vmem:[%s4336_s3 + $0xc8] sm:$0xf0] }
  0xd8   : > { %1935 = vmatpush.bf16.msra.mxu1 %v2883_v21  ;;  %v3177_v21 = vld [vmem:[%s4336_s3 + $0x64] sm:$0xf]  ;;  %v2572_v7 = vld [vmem:[%s4336_s3 + $0x28] sm:$0xf0] }
  0xd9   : > { %v2607_v24 = vor.u32 %v3177_v21, %v2604_v9  ;;  %v3169_v6 = vld [vmem:[%s4336_s3 + $0x24] sm:$0xf]  ;;  %v3207_v21 = vld [vmem:[%s4336_s3 + $0x154] sm:$0xf]  ;;  %v2724_v9 = vld [vmem:[%s4336_s3 + $0x158] sm:$0xf0] }
  0xda   : > { %1961 = vmatpush.bf16.msra.mxu3 %v3011_v44  ;;  %v3211_v44 = vld [vmem:[%s4336_s3 + $0x174] sm:$0xf] }
  0xdb   : > { %v939_v33 = vpop.f32.mrf.mxu2  ;;  %1923 = vmatpush.bf16.msra.mxu0 %v2811_v28  ;;  %v3191_v28 = vld [vmem:[%s4336_s3 + $0xd4] sm:$0xf] }
  0xdc   : > { %v952_v38 = vpop.f32.mrf.mxu3  ;;  %v2946_v33 = vld [vmem:[%s4336_s3 + $0x310] sm:$0xf]  ;;  %1936 = vmatpush.bf16.msra.mxu1 %v2875_v32 }
  0xdd   : > { %v2947_v1 = vor.u32 %v3264_v34, %v2946_v33  ;;  %v912_v38 = vadd.f32 %v3658_v42, %v899_v29  ;;  %v3278_v42 = vld [vmem:[%s4336_s3 + $0x384] sm:$0xf0]  ;;  %v2660_v29 = vld [vmem:[%s4336_s3 + $0xd8] sm:$0xf0]  ;;  %v2599_v34 = vor.u32 %v3175_v26, %v2596_v27  ;;  %v3167_v26 = vld [vmem:[%s4336_s3 + $0x14] sm:$0xf] }
  0xde   : > { %v3003_v57 = vor.u32 %v3278_v42, %v3002_v49  ;;  %v2564_v27 = vld [vmem:[%s4336_s3 + $0x18] sm:$0xf0] }
  0xdf   : > { %1948 = vmatpush.bf16.msra.mxu2 %v2947_v1  ;;  %v925_v52 = vadd.f32 %v3660_v48, %v912_v38 }
  0xe0   : > { %1962 = vmatpush.bf16.msra.mxu3 %v3003_v57  ;;  %v2580_v57 = vld [vmem:[%s4336_s3 + $0x38] sm:$0xf0] }
  0xe1   : > { %v1006_v59 = vmax.f32 %v925_v52, 0.0 }
  0xe3   : > { %1949 = vmatpush.bf16.msra.mxu2 %v2939_v51  ;;  %v2804_v51 = vld [vmem:[%s4336_s3 + $0x1f8] sm:$0xf0] }
  0xeb   : > { %v963_v31 = vpop.f32.mrf.mxu0 }
  0xec   : > { %v976_v35 = vpop.f32.mrf.mxu1  ;;  %v964_v37 = vadd.f32 %v963_v31, %v951_v30 }
  0xee   : > { %v977_v47 = vadd.f32 %v976_v35, %v964_v37  ;;  %v2663_v35 = vor.u32 %v3191_v28, %v2660_v29  ;;  %v2588_v37 = vld [vmem:[%s4336_s3 + $0x48] sm:$0xf0]  ;;  %v3183_v28 = vld [vmem:[%s4336_s3 + $0x94] sm:$0xf]  ;;  %v2628_v29 = vld [vmem:[%s4336_s3 + $0x98] sm:$0xf0] }
  0xef   : > { %v2591_v52 = vor.u32 %v3173_v36, %v2588_v37  ;;  %v2567_v36 = vor.u32 %v3167_v26, %v2564_v27  ;;  %v2631_v37 = vor.u32 %v3183_v28, %v2628_v29  ;;  %v3213_v26 = vld [vmem:[%s4336_s3 + $0x184] sm:$0xf]  ;;  %v2748_v27 = vld [vmem:[%s4336_s3 + $0x188] sm:$0xf0]  ;;  %v3275_v28 = vld [vmem:[%s4336_s3 + $0x374] sm:$0xf] }
  0xf3   : > { %v989_v50 = vpop.f32.mrf.mxu2  ;;  %v965_v55 = vpop.f32.mrf.mxu0 }
  0xf4   : > { %v990_v53 = vadd.f32 %v989_v50, %v977_v47  ;;  %v1002_v54 = vpop.f32.mrf.mxu3  ;;  %v978_v56 = vpop.f32.mrf.mxu1  ;;  %v2740_v47 = vld [vmem:[%s4336_s3 + $0x178] sm:$0xf0]  ;;  %v3227_v50 = vld [vmem:[%s4336_s3 + $0x1f4] sm:$0xf] }
  0xf5   : > { %v3171_v56 = vld [vmem:[%s4336_s3 + $0x34] sm:$0xf] }
  0xf6   : > { %v1003_v58 = vadd.f32 %v1002_v54, %v990_v53  ;;  %v2655_v53 = vor.u32 %v3189_v45, %v2652_v4  ;;  %v2583_v8 = vor.u32 %v3171_v56, %v2580_v57  ;;  %v3165_v45 = vld [vmem:[%s4336_s3 + $0x4] sm:$0xf]  ;;  %v2556_v4 = vld [vmem:[%s4336_s3 + $0x8] sm:$0xf0]  ;;  %v3259_v56 = vld [vmem:[%s4336_s3 + $0x2f4] sm:$0xf] }
  0xf7   : > { %v2932_v57 = vld [vmem:[%s4336_s3 + $0x2f8] sm:$0xf0] }
  0xf8   : > { %v1007_v60 = vmax.f32 %v1003_v58, 0.0  ;;  %v3187_v58 = vld [vmem:[%s4336_s3 + $0xb4] sm:$0xf] }
  0xfa   : > { %v1008_v61 = vpack.c.bf16 %v1007_v60, %v1006_v59 }
  0xfb   : > { %v991_v48 = vpop.f32.mrf.mxu2 }
  0xfc   : > { %v1028_v63 = vshrl.u32 %v1008_v61, 16  ;;  %v1004_v0 = vpop.f32.mrf.mxu3  ;;  %v1031_v18 = vshll.u32 %v1008_v61, 16  ;;  %v2644_v48 = vld [vmem:[%s4336_s3 + $0xb8] sm:$0xf0] }
  0xfd   : > { %v2807_v0 = vor.u32 %v3227_v50, %v2804_v51  ;;  %v2647_v5 = vor.u32 %v3187_v58, %v2644_v48  ;;  %v2772_v50 = vld [vmem:[%s4336_s3 + $0x1b8] sm:$0xf0]  ;;  %v2559_v51 = vor.u32 %v3165_v45, %v2556_v4  ;;  %v2764_v48 = vld [vmem:[%s4336_s3 + $0x1a8] sm:$0xf0]  ;;  %v2751_v4 = vor.u32 %v3213_v26, %v2748_v27  ;;  %v3229_v26 = vld [vmem:[%s4336_s3 + $0x204] sm:$0xf] }
  0xfe   : > { %v1030_v16 = vrot.slane %v1028_v63, 7  ;;  %v2743_v63 = vor.u32 %v3211_v44, %v2740_v47  ;;  %v3203_v44 = vld [vmem:[%s4336_s3 + $0x134] sm:$0xf]  ;;  %v2812_v27 = vld [vmem:[%s4336_s3 + $0x208] sm:$0xf0] }
  0xff   : > { %v3243_v47 = vld [vmem:[%s4336_s3 + $0x274] sm:$0xf] }
 0x100   : > { %v1033_v43 = vor.u32 %v1031_v18, %v1030_v16  ;;  %v1034_v46 = vrot.slane %v1030_v16, 4  ;;  %v3209_v16 = vld [vmem:[%s4336_s3 + $0x164] sm:$0xf] }
 0x102   : > { %v1043_v10 = vsel %vm1041_vm0, %v1033_v43, %v1042_v2  ;;  %v1046_v11 = vsel %vm1015_vm8, %v1034_v46, %v1045_v3  ;;  %v2732_v3 = vld [vmem:[%s4336_s3 + $0x168] sm:$0xf0]  ;;  %v3225_v43 = vld [vmem:[%s4336_s3 + $0x1e4] sm:$0xf] }
 0x103   : > { %1044 = vst [vmem:[#allocation2] sm:$0xff] %v1043_v10  ;;  %v1053_v13 = vunpack.c.l.b16 %v1043_v10  ;;  %v1054_v17 = vunpack.c.h.b16 %v1043_v10  ;;  %v2796_v46 = vld [vmem:[%s4336_s3 + $0x1e8] sm:$0xf0] }
 0x104   : > { %1047 = vst [vmem:[#allocation2 + $0x8] sm:$0x11] %v1046_v11 }
 0x105   : > { %v3923_v40 = vpack.c.b16 %v1053_v13, %v1053_v13  ;;  %v3925_v22 = vpack.c.b16 %v1054_v17, %v1054_v17 }
 0x107   : > { %1872 = vmatmul.bf16.vlgmr.msrb.gmra.mxu0 %v3923_v40  ;;  %1885 = vmatmul.bf16.vlgmr.msrb.gmra.mxu1 %v3925_v22 }
 0x108   : > { %1968 = vmatpush.bf16.msrb.mxu0 %v2615_v19  ;;  %1981 = vmatpush.bf16.msrb.mxu1 %v2679_v20  ;;  %v2735_v19 = vor.u32 %v3209_v16, %v2732_v3  ;;  %v2799_v20 = vor.u32 %v3225_v43, %v2796_v46  ;;  %v3241_v16 = vld [vmem:[%s4336_s3 + $0x264] sm:$0xf]  ;;  %v2860_v3 = vld [vmem:[%s4336_s3 + $0x268] sm:$0xf0] }
 0x109   : > { %v3257_v43 = vld [vmem:[%s4336_s3 + $0x2e4] sm:$0xf]  ;;  %v2924_v46 = vld [vmem:[%s4336_s3 + $0x2e8] sm:$0xf0] }
 0x10a   : > { %v1050_v30 = vld [vmem:[#allocation2] sm:$0xee] }
 0x10b   : > { %v1049_v31 = vld [vmem:[#allocation2 + $0x8] sm:$0x11]  ;;  %v1081_v1 = vunpack.c.l.b16 %v1050_v30  ;;  %v1082_v38 = vunpack.c.h.b16 %v1050_v30  ;;  %v2727_v30 = vor.u32 %v3207_v21, %v2724_v9  ;;  %v3239_v21 = vld [vmem:[%s4336_s3 + $0x254] sm:$0xf]  ;;  %v2852_v9 = vld [vmem:[%s4336_s3 + $0x258] sm:$0xf0] }
 0x10c   : > { %1969 = vmatpush.bf16.msrb.mxu0 %v2607_v24  ;;  %1982 = vmatpush.bf16.msrb.mxu1 %v2671_v25  ;;  %v1060_v32 = vunpack.c.l.b16 %v1049_v31  ;;  %v1061_v33 = vunpack.c.h.b16 %v1049_v31  ;;  %v2575_v24 = vor.u32 %v3169_v6, %v2572_v7  ;;  %v2791_v31 = vor.u32 %v3223_v12, %v2788_v23  ;;  %v3199_v6 = vld [vmem:[%s4336_s3 + $0x114] sm:$0xf]  ;;  %v2692_v7 = vld [vmem:[%s4336_s3 + $0x118] sm:$0xf0] }
 0x10d   : > { %v3255_v12 = vld [vmem:[%s4336_s3 + $0x2d4] sm:$0xf]  ;;  %v2916_v23 = vld [vmem:[%s4336_s3 + $0x2d8] sm:$0xf0]  ;;  %v2855_v29 = vor.u32 %v3239_v21, %v2852_v9 }
 0x10e   : > { %v1062_v39 = vpack.c.b16 %v1060_v32, %v1053_v13  ;;  %v1063_v41 = vpack.c.b16 %v1061_v33, %v1054_v17  ;;  %v3974_v54 = vpack.c.b16 %v1060_v32, %v1081_v1  ;;  %v3976_v55 = vpack.c.b16 %v1061_v33, %v1082_v38  ;;  %v3185_v13 = vld [vmem:[%s4336_s3 + $0xa4] sm:$0xf]  ;;  %v2636_v17 = vld [vmem:[%s4336_s3 + $0xa8] sm:$0xf0] }
 0x10f   : > { %v2639_v25 = vor.u32 %v3185_v13, %v2636_v17  ;;  %v3205_v32 = vld [vmem:[%s4336_s3 + $0x144] sm:$0xf]  ;;  %v2716_v33 = vld [vmem:[%s4336_s3 + $0x148] sm:$0xf0]  ;;  %v3215_v13 = vld [vmem:[%s4336_s3 + $0x194] sm:$0xf] }
 0x110   : > { %v1067_v49 = vshll.u32 %v1062_v39, 16  ;;  %v1074_v42 = vshll.u32 %v1063_v41, 16  ;;  %1970 = vmatpush.bf16.msrb.mxu0 %v2599_v34  ;;  %1983 = vmatpush.bf16.msrb.mxu1 %v2663_v35  ;;  %v1065_v59 = vshrl.u32 %v1062_v39, 16  ;;  %v1072_v61 = vshrl.u32 %v1063_v41, 16  ;;  %v3221_v34 = vld [vmem:[%s4336_s3 + $0x1c4] sm:$0xf] }
 0x111   : > { %v1085_v10 = vrot.slane %v3974_v54, 1  ;;  %v1086_v11 = vrot.slane %v3976_v55, 1  ;;  %v2780_v35 = vld [vmem:[%s4336_s3 + $0x1c8] sm:$0xf0]  ;;  %v3181_v1 = vld [vmem:[%s4336_s3 + $0x84] sm:$0xf]  ;;  %v2719_v39 = vor.u32 %v3205_v32, %v2716_v33 }
 0x112   : > { %v1069_v60 = vrot.slane %v1067_v49, 1  ;;  %v1076_v62 = vrot.slane %v1074_v42, 1  ;;  %v2620_v38 = vld [vmem:[%s4336_s3 + $0x88] sm:$0xf0]  ;;  %v2783_v41 = vor.u32 %v3221_v34, %v2780_v35  ;;  %v2708_v49 = vld [vmem:[%s4336_s3 + $0x138] sm:$0xf0] }
 0x113   : > { %v3219_v42 = vld [vmem:[%s4336_s3 + $0x1b4] sm:$0xf]  ;;  %v2711_v58 = vor.u32 %v3203_v44, %v2708_v49  ;;  %v2756_v17 = vld [vmem:[%s4336_s3 + $0x198] sm:$0xf0]  ;;  %v2844_v35 = vld [vmem:[%s4336_s3 + $0x248] sm:$0xf0] }
 0x114   : > { %v3993_v18 = vor.u32 %v1069_v60, %v1065_v59  ;;  %v3995_v2 = vor.u32 %v1076_v62, %v1072_v61  ;;  %1971 = vmatpush.bf16.msrb.mxu0 %v2591_v52  ;;  %1984 = vmatpush.bf16.msrb.mxu1 %v2655_v53  ;;  %v2623_v52 = vor.u32 %v3181_v1, %v2620_v38  ;;  %v2868_v53 = vld [vmem:[%s4336_s3 + $0x278] sm:$0xf0]  ;;  %v3201_v60 = vld [vmem:[%s4336_s3 + $0x124] sm:$0xf]  ;;  %v2700_v61 = vld [vmem:[%s4336_s3 + $0x128] sm:$0xf0] }
 0x115   : > { %v2775_v59 = vor.u32 %v3219_v42, %v2772_v50  ;;  %v3217_v62 = vld [vmem:[%s4336_s3 + $0x1a4] sm:$0xf]  ;;  %v2996_v32 = vld [vmem:[%s4336_s3 + $0x378] sm:$0xf0]  ;;  %v3291_v33 = vld [vmem:[%s4336_s3 + $0x3f4] sm:$0xf] }
 0x116   : > { %1898 = vmatmul.bf16.vlgmr.msrb.gmra.mxu2 %v3993_v18  ;;  %1911 = vmatmul.bf16.vlgmr.msrb.gmra.mxu3 %v3995_v2  ;;  %v3060_v34 = vld [vmem:[%s4336_s3 + $0x3f8] sm:$0xf0]  ;;  %v2999_v1 = vor.u32 %v3275_v28, %v2996_v32  ;;  %v3289_v44 = vld [vmem:[%s4336_s3 + $0x3e4] sm:$0xf]  ;;  %v3235_v50 = vld [vmem:[%s4336_s3 + $0x234] sm:$0xf] }
 0x117   : > { %1994 = vmatpush.bf16.msrb.mxu2 %v2743_v63  ;;  %2007 = vmatpush.bf16.msrb.mxu3 %v2807_v0  ;;  %v2871_v63 = vor.u32 %v3243_v47, %v2868_v53  ;;  %v2935_v0 = vor.u32 %v3259_v56, %v2932_v57  ;;  %v3063_v38 = vor.u32 %v3291_v33, %v3060_v34  ;;  %v3052_v47 = vld [vmem:[%s4336_s3 + $0x3e8] sm:$0xf0]  ;;  %v2900_v53 = vld [vmem:[%s4336_s3 + $0x2b8] sm:$0xf0]  ;;  %v3245_v28 = vld [vmem:[%s4336_s3 + $0x284] sm:$0xf] }
 0x118   : > { %1924 = vmatmul.bf16.vlgmr.msra.gmra.mxu0 %v1085_v10  ;;  %1937 = vmatmul.bf16.vlgmr.msra.gmra.mxu1 %v1086_v11  ;;  %v3055_v57 = vor.u32 %v3289_v44, %v3052_v47  ;;  %v3265_v32 = vld [vmem:[%s4336_s3 + $0x324] sm:$0xf]  ;;  %v2956_v33 = vld [vmem:[%s4336_s3 + $0x328] sm:$0xf0] }
 0x119   : > { %1972 = vmatpush.bf16.msrb.mxu0 %v2583_v8  ;;  %1985 = vmatpush.bf16.msrb.mxu1 %v2647_v5  ;;  %v2703_v8 = vor.u32 %v3201_v60, %v2700_v61  ;;  %v2767_v5 = vor.u32 %v3217_v62, %v2764_v48  ;;  %v3287_v60 = vld [vmem:[%s4336_s3 + $0x3d4] sm:$0xf]  ;;  %v3044_v61 = vld [vmem:[%s4336_s3 + $0x3d8] sm:$0xf0]  ;;  %v3281_v34 = vld [vmem:[%s4336_s3 + $0x3a4] sm:$0xf] }
 0x11b   : > { %1995 = vmatpush.bf16.msrb.mxu2 %v2735_v19  ;;  %2008 = vmatpush.bf16.msrb.mxu3 %v2799_v20  ;;  %v2863_v19 = vor.u32 %v3241_v16, %v2860_v3  ;;  %v2927_v20 = vor.u32 %v3257_v43, %v2924_v46  ;;  %v3249_v16 = vld [vmem:[%s4336_s3 + $0x2a4] sm:$0xf]  ;;  %v2892_v3 = vld [vmem:[%s4336_s3 + $0x2a8] sm:$0xf0]  ;;  %v3047_v46 = vor.u32 %v3287_v60, %v3044_v61 }
 0x11d   : > { %1973 = vmatpush.bf16.msrb.mxu0 %v2575_v24  ;;  %1986 = vmatpush.bf16.msrb.mxu1 %v2639_v25  ;;  %v2695_v24 = vor.u32 %v3199_v6, %v2692_v7  ;;  %v2759_v25 = vor.u32 %v3215_v13, %v2756_v17  ;;  %v2895_v7 = vor.u32 %v3249_v16, %v2892_v3  ;;  %v3231_v13 = vld [vmem:[%s4336_s3 + $0x214] sm:$0xf]  ;;  %v2820_v17 = vld [vmem:[%s4336_s3 + $0x218] sm:$0xf0] }
 0x11f   : > { %1996 = vmatpush.bf16.msrb.mxu2 %v2727_v30  ;;  %2009 = vmatpush.bf16.msrb.mxu3 %v2791_v31  ;;  %v2919_v30 = vor.u32 %v3255_v12, %v2916_v23  ;;  %v3237_v31 = vld [vmem:[%s4336_s3 + $0x244] sm:$0xf]  ;;  %v3267_v12 = vld [vmem:[%s4336_s3 + $0x334] sm:$0xf]  ;;  %v2964_v23 = vld [vmem:[%s4336_s3 + $0x338] sm:$0xf0] }
 0x120   : > { %v2847_v49 = vor.u32 %v3237_v31, %v2844_v35  ;;  %v3020_v35 = vld [vmem:[%s4336_s3 + $0x3a8] sm:$0xf0] }
 0x121   : > { %1974 = vmatpush.bf16.msrb.mxu0 %v2567_v36  ;;  %1987 = vmatpush.bf16.msrb.mxu1 %v2631_v37  ;;  %v3253_v36 = vld [vmem:[%s4336_s3 + $0x2c4] sm:$0xf]  ;;  %v2908_v37 = vld [vmem:[%s4336_s3 + $0x2c8] sm:$0xf0] }
 0x122   : > { %v2911_v42 = vor.u32 %v3253_v36, %v2908_v37  ;;  %v2815_v36 = vor.u32 %v3229_v26, %v2812_v27 }
 0x123   : > { %1997 = vmatpush.bf16.msrb.mxu2 %v2719_v39  ;;  %2010 = vmatpush.bf16.msrb.mxu3 %v2783_v41  ;;  %v3273_v39 = vld [vmem:[%s4336_s3 + $0x364] sm:$0xf]  ;;  %v2988_v41 = vld [vmem:[%s4336_s3 + $0x368] sm:$0xf0] }
 0x124   : > { %v2991_v56 = vor.u32 %v3273_v39, %v2988_v41  ;;  %v3279_v39 = vld [vmem:[%s4336_s3 + $0x394] sm:$0xf]  ;;  %v3012_v41 = vld [vmem:[%s4336_s3 + $0x398] sm:$0xf0] }
 0x125   : > { %1975 = vmatpush.bf16.msrb.mxu0 %v2559_v51  ;;  %1988 = vmatpush.bf16.msrb.mxu1 %v2623_v52  ;;  %v2836_v51 = vld [vmem:[%s4336_s3 + $0x238] sm:$0xf0]  ;;  %v3251_v52 = vld [vmem:[%s4336_s3 + $0x2b4] sm:$0xf]  ;;  %v3015_v47 = vor.u32 %v3279_v39, %v3012_v41 }
 0x126   : > { %1950 = vmatmul.bf16.vlgmr.msra.gmra.mxu2 %v3427_v14  ;;  %1963 = vmatmul.bf16.vlgmr.msra.gmra.mxu3 %v3429_v15  ;;  %v2839_v62 = vor.u32 %v3235_v50, %v2836_v51  ;;  %v2903_v48 = vor.u32 %v3251_v52, %v2900_v53  ;;  %v3277_v50 = vld [vmem:[%s4336_s3 + $0x384] sm:$0xf]  ;;  %v3004_v51 = vld [vmem:[%s4336_s3 + $0x388] sm:$0xf0] }
 0x127   : > { %1998 = vmatpush.bf16.msrb.mxu2 %v2711_v58  ;;  %2011 = vmatpush.bf16.msrb.mxu3 %v2775_v59  ;;  %v3271_v58 = vld [vmem:[%s4336_s3 + $0x354] sm:$0xf]  ;;  %v2980_v59 = vld [vmem:[%s4336_s3 + $0x358] sm:$0xf0]  ;;  %v3007_v54 = vor.u32 %v3277_v50, %v3004_v51 }
 0x128   : > { %1976 = vmatmul.bf16.vlgmr.msrb.gmra.mxu0 %v3923_v40  ;;  %1989 = vmatmul.bf16.vlgmr.msrb.gmra.mxu1 %v3925_v22  ;;  %v3197_v40 = vld [vmem:[%s4336_s3 + $0x104] sm:$0xf]  ;;  %v2684_v22 = vld [vmem:[%s4336_s3 + $0x108] sm:$0xf0]  ;;  %v2983_v43 = vor.u32 %v3271_v58, %v2980_v59 }
 0x129   : > { %2020 = vmatpush.bf16.msra.mxu0 %v2871_v63  ;;  %2033 = vmatpush.bf16.msra.mxu1 %v2935_v0  ;;  %v2687_v45 = vor.u32 %v3197_v40, %v2684_v22  ;;  %v3233_v63 = vld [vmem:[%s4336_s3 + $0x224] sm:$0xf]  ;;  %v2828_v0 = vld [vmem:[%s4336_s3 + $0x228] sm:$0xf0]  ;;  %v2823_v40 = vor.u32 %v3231_v13, %v2820_v17 }
 0x12a   : > { %v2831_v6 = vor.u32 %v3233_v63, %v2828_v0 }
 0x12b   : > { %1999 = vmatpush.bf16.msrb.mxu2 %v2703_v8  ;;  %2012 = vmatpush.bf16.msrb.mxu3 %v2767_v5  ;;  %v3285_v8 = vld [vmem:[%s4336_s3 + $0x3c4] sm:$0xf]  ;;  %v3036_v5 = vld [vmem:[%s4336_s3 + $0x3c8] sm:$0xf0] }
 0x12c   : > { %v3039_v9 = vor.u32 %v3285_v8, %v3036_v5 }
 0x12d   : > { %2021 = vmatpush.bf16.msra.mxu0 %v2863_v19  ;;  %2034 = vmatpush.bf16.msra.mxu1 %v2927_v20  ;;  %v3247_v19 = vld [vmem:[%s4336_s3 + $0x294] sm:$0xf]  ;;  %v2884_v20 = vld [vmem:[%s4336_s3 + $0x298] sm:$0xf0] }
 0x12e   : > { %v2887_v22 = vor.u32 %v3247_v19, %v2884_v20 }
 0x12f   : > { %2000 = vmatpush.bf16.msrb.mxu2 %v2695_v24  ;;  %2013 = vmatpush.bf16.msrb.mxu3 %v2759_v25  ;;  %v3283_v24 = vld [vmem:[%s4336_s3 + $0x3b4] sm:$0xf]  ;;  %v3028_v25 = vld [vmem:[%s4336_s3 + $0x3b8] sm:$0xf0] }
 0x130   : > { %v3031_v31 = vor.u32 %v3283_v24, %v3028_v25 }
 0x131   : > { %2022 = vmatpush.bf16.msra.mxu0 %v2855_v29  ;;  %2035 = vmatpush.bf16.msra.mxu1 %v2919_v30  ;;  %v2876_v29 = vld [vmem:[%s4336_s3 + $0x288] sm:$0xf0]  ;;  %v2967_v30 = vor.u32 %v3267_v12, %v2964_v23 }
 0x132   : > { %v2879_v37 = vor.u32 %v3245_v28, %v2876_v29 }
 0x133   : > { %2001 = vmatpush.bf16.msrb.mxu2 %v2687_v45  ;;  %2014 = vmatpush.bf16.msrb.mxu3 %v2751_v4  ;;  %v2959_v45 = vor.u32 %v3265_v32, %v2956_v33  ;;  %v3023_v4 = vor.u32 %v3281_v34, %v3020_v35 }
 0x135   : > { %2023 = vmatpush.bf16.msra.mxu0 %v2847_v49  ;;  %2036 = vmatpush.bf16.msra.mxu1 %v2911_v42  ;;  %v3261_v49 = vld [vmem:[%s4336_s3 + $0x304] sm:$0xf]  ;;  %v2940_v42 = vld [vmem:[%s4336_s3 + $0x308] sm:$0xf0] }
 0x136   : > { %2002 = vmatmul.bf16.vlgmr.msrb.gmra.mxu2 %v3993_v18  ;;  %2015 = vmatmul.bf16.vlgmr.msrb.gmra.mxu3 %v3995_v2  ;;  %v3269_v18 = vld [vmem:[%s4336_s3 + $0x344] sm:$0xf]  ;;  %v2972_v2 = vld [vmem:[%s4336_s3 + $0x348] sm:$0xf0]  ;;  %v2943_v52 = vor.u32 %v3261_v49, %v2940_v42 }
 0x137   : > { %2046 = vmatpush.bf16.msra.mxu2 %v2999_v1  ;;  %2059 = vmatpush.bf16.msra.mxu3 %v3063_v38  ;;  %v2975_v21 = vor.u32 %v3269_v18, %v2972_v2  ;;  %v3263_v1 = vld [vmem:[%s4336_s3 + $0x314] sm:$0xf]  ;;  %v2948_v38 = vld [vmem:[%s4336_s3 + $0x318] sm:$0xf0] }
 0x138   : > { %v2951_v44 = vor.u32 %v3263_v1, %v2948_v38 }
 0x139   : > { %2024 = vmatpush.bf16.msra.mxu0 %v2839_v62  ;;  %2037 = vmatpush.bf16.msra.mxu1 %v2903_v48 }
 0x13b   : > { %2047 = vmatpush.bf16.msra.mxu2 %v2991_v56  ;;  %2060 = vmatpush.bf16.msra.mxu3 %v3055_v57 }
 0x13d   : > { %2025 = vmatpush.bf16.msra.mxu0 %v2831_v6  ;;  %2038 = vmatpush.bf16.msra.mxu1 %v2895_v7 }
 0x13f   : > { %2048 = vmatpush.bf16.msra.mxu2 %v2983_v43  ;;  %2061 = vmatpush.bf16.msra.mxu3 %v3047_v46 }
 0x141   : > { %2026 = vmatpush.bf16.msra.mxu0 %v2823_v40  ;;  %2039 = vmatpush.bf16.msra.mxu1 %v2887_v22 }
 0x143   : > { %2049 = vmatpush.bf16.msra.mxu2 %v2975_v21  ;;  %2062 = vmatpush.bf16.msra.mxu3 %v3039_v9 }
 0x145   : > { %2027 = vmatpush.bf16.msra.mxu0 %v2815_v36  ;;  %2040 = vmatpush.bf16.msra.mxu1 %v2879_v37 }
 0x147   : > { %2050 = vmatpush.bf16.msra.mxu2 %v2967_v30  ;;  %2063 = vmatpush.bf16.msra.mxu3 %v3031_v31 }
 0x148   : > { %2028 = vmatmul.bf16.vlgmr.msra.gmra.mxu0 %v1085_v10  ;;  %2041 = vmatmul.bf16.vlgmr.msra.gmra.mxu1 %v1086_v11 }
 0x14b   : > { %2051 = vmatpush.bf16.msra.mxu2 %v2959_v45  ;;  %2064 = vmatpush.bf16.msra.mxu3 %v3023_v4 }
 0x14f   : > { %2052 = vmatpush.bf16.msra.mxu2 %v2951_v44  ;;  %2065 = vmatpush.bf16.msra.mxu3 %v3015_v47 }
 0x153   : > { %2053 = vmatpush.bf16.msra.mxu2 %v2943_v52  ;;  %2066 = vmatpush.bf16.msra.mxu3 %v3007_v54 }
 0x156   : > { %2054 = vmatmul.bf16.vlgmr.msra.gmra.mxu2 %v3427_v14  ;;  %2067 = vmatmul.bf16.vlgmr.msra.gmra.mxu3 %v3429_v15 }
 0x184   : > { %v1873_v55 = vpop.f32.mrf.mxu0  ;;  %v1886_v10 = vpop.f32.mrf.mxu1 }
 0x185   : > { %v1887_v60 = vadd.f32 %v1886_v10, %v1873_v55 }
 0x18c   : > { %v1875_v11 = vpop.f32.mrf.mxu0  ;;  %v1888_v53 = vpop.f32.mrf.mxu1 }
 0x195   : > { %v1925_v56 = vpop.f32.mrf.mxu0  ;;  %v1938_v57 = vpop.f32.mrf.mxu1 }
 0x199   : > { %v1899_v58 = vpop.f32.mrf.mxu2  ;;  %v1912_v59 = vpop.f32.mrf.mxu3 }
 0x19a   : > { %v1900_v61 = vadd.f32 %v1899_v58, %v1887_v60 }
 0x19c   : > { %v1913_v63 = vadd.f32 %v1912_v59, %v1900_v61 }
 0x19d   : > { %v1927_v62 = vpop.f32.mrf.mxu0  ;;  %v1940_v48 = vpop.f32.mrf.mxu1 }
 0x19e   : > { %v1926_v3 = vadd.f32 %v1925_v56, %v1913_v63 }
 0x1a0   : > { %v1939_v15 = vadd.f32 %v1938_v57, %v1926_v3 }
 0x1a1   : > { %v1901_v0 = vpop.f32.mrf.mxu2  ;;  %v1914_v16 = vpop.f32.mrf.mxu3 }
 0x1a5   : > { %v1977_v14 = vpop.f32.mrf.mxu0  ;;  %v1990_v43 = vpop.f32.mrf.mxu1 }
 0x1a6   : > { %v1991_v24 = vadd.f32 %v1990_v43, %v1977_v14 }
 0x1a9   : > { %v1951_v46 = vpop.f32.mrf.mxu2  ;;  %v1964_v18 = vpop.f32.mrf.mxu3 }
 0x1aa   : > { %v1952_v2 = vadd.f32 %v1951_v46, %v1939_v15 }
 0x1ac   : > { %v1965_v8 = vadd.f32 %v1964_v18, %v1952_v2 }
 0x1ad   : > { %v1979_v6 = vpop.f32.mrf.mxu0  ;;  %v1992_v7 = vpop.f32.mrf.mxu1 }
 0x1ae   : > { %v2072_v5 = vmax.f32 %v1965_v8, 0.0 }
 0x1b0   : > { %2074 = vst [vmem:[%s234_s16] sm:$0xff] %v2072_v5 }
 0x1b1   : > { %v1953_v13 = vpop.f32.mrf.mxu2  ;;  %v1966_v17 = vpop.f32.mrf.mxu3 }
 0x1b9   : > { %v2003_v19 = vpop.f32.mrf.mxu2  ;;  %v2016_v20 = vpop.f32.mrf.mxu3 }
 0x1ba   : > { %v2004_v25 = vadd.f32 %v2003_v19, %v1991_v24 }
 0x1bc   : > { %v2017_v26 = vadd.f32 %v2016_v20, %v2004_v25 }
 0x1c1   : > { %v2005_v21 = vpop.f32.mrf.mxu2  ;;  %v2018_v9 = vpop.f32.mrf.mxu3 }
 0x1c5   : > { %v2029_v12 = vpop.f32.mrf.mxu0  ;;  %v2042_v23 = vpop.f32.mrf.mxu1 }
 0x1c6   : > { %v2030_v27 = vadd.f32 %v2029_v12, %v2017_v26 }
 0x1c8   : > { %v2043_v28 = vadd.f32 %v2042_v23, %v2030_v27 }
 0x1cd   : > { %v2031_v40 = vpop.f32.mrf.mxu0  ;;  %v2044_v22 = vpop.f32.mrf.mxu1 }
 0x1d9   : > { %v2055_v29 = vpop.f32.mrf.mxu2  ;;  %v2068_v30 = vpop.f32.mrf.mxu3 }
 0x1da   : > { %v2056_v31 = vadd.f32 %v2055_v29, %v2043_v28 }
 0x1dc   : > { %v2069_v32 = vadd.f32 %v2068_v30, %v2056_v31 }
 0x1de   : > { %v2073_v33 = vmax.f32 %v2069_v32, 0.0 }
 0x1e0   : > { %2075 = vst [vmem:[%s234_s16 + $0x8] sm:$0xff] %v2073_v33 }
 0x1e1   : > { %v2057_v34 = vpop.f32.mrf.mxu2  ;;  %v2070_v35 = vpop.f32.mrf.mxu3 }
 0x1e2 PF: > { %s15_s15 = sadd.s32 1, %s3354_s15  }
 0x1e3   : > { %p12_p7 = scmp.ge.s32.totalorder %s15_s15, 4  }
 0x1e5   :  { %14 = sbr.rel (!%p12_p7) target bundleno = 1 (0x1), region = 74 }
 0x1ea   :  { %2097 = vsyncpa [#allocation4], 1 }
 0x1eb   :  { %2099 = vsyncpa [#allocation4 + $0x1], 1 }

</bundles_post_ra>
